<compile_context>
chip_gen: v7x
topology: tpu7x:2x2x1
jax: 0.10.0
libtpu: 0.0.40
codegen_flags: <defaults>
</compile_context>

<pallas_src>
import jax
import jax.numpy as jnp
import numpy as np
from jax.experimental import pallas as pl
from jax.experimental.pallas import tpu as pltpu

# ----- architecture constants (from arch=((4, 8), [1], [4], 1, 2, 1)) -----
C_IN = 4          # num_class_elements  (input channels)
VIS_RES = 8       # vis_field_res       (spatial length)
DIM = 4           # CNN_dims[-1]
OTHER = 1         # RNN_other_input_size
HID = 2           # RNN_hidden_size
OUT = 1           # LCL_output_size

K_STEM, S_STEM = 4, 4
L1 = VIS_RES // S_STEM        # spatial length after stem conv = 2
K_DW, P_DW = 7, 3             # depthwise conv kernel / padding
EXPAND = 4 * DIM              # pointwise expansion = 16
RNN_IN = DIM + OTHER          # 5
EPS = 1e-6

VIS_ROWS = L1 * K_STEM * C_IN   # 32: stacked (t, j, c) features, batch on lanes
OUT_ROWS = OUT + HID            # 3: packed [action; hidden]

# ----- "mats" slab: compact MXU operands (block-diagonal over the 2 positions)
MAT_ROWS, MAT_COLS = 64, 128
R_STEM_BD = 0     # (8, 32)   stem weight, block-diag over positions
R_PW2_BD = 8      # (8, 32)   pointwise-project weight, block-diag
R_GM8 = 16        # (8, 8)    per-position channel-mean matrix (1/DIM blocks)
R_PW1_BD = 24     # (32, 8)   pointwise-expand weight, block-diag
R_FNN_WV = 56     # (2, 4)    FNN weight, vis-feature columns

# ----- "vecs" slab: per-channel vectors PRE-BROADCAST across block_b lanes --
V_STEM_B = 0      # (8, Bb)
V_STEM_LN_G = 8
V_STEM_LN_B = 16
V_DW_A = 24       # depthwise tap for "same position"
V_DW_B = 32       # depthwise tap for "other position"
V_DW_BIAS = 40
V_BLK_LN_G = 48
V_BLK_LN_B = 56
V_PW2_B = 64
V_PW1_B = 72      # (32, Bb)
V_GRN_G = 104     # (32, Bb)
V_GRN_B = 136     # (32, Bb)
V_FIN_LN_G = 168  # (4, Bb)
V_FIN_LN_B = 172  # (4, Bb)
V_FNN_WO = 176    # (2, Bb)   FNN weight column for the 'other' input
V_FNN_B = 178     # (2, Bb)
V_LCL_W0 = 180    # (1, Bb)
V_LCL_W1 = 181    # (1, Bb)
V_LCL_B = 182     # (1, Bb)
VEC_ROWS = 184


def world_model_kernel(vis_ref, other_ref, mats_ref, vecs_ref, out_ref):
    f32 = jnp.float32

    # ----- compact matrices (tiny loads; MXU operands) -----
    stem_bd = mats_ref[R_STEM_BD:R_STEM_BD + 8, 0:32]            # (8, 32)
    pw2_bd = mats_ref[R_PW2_BD:R_PW2_BD + 8, 0:32]               # (8, 32)
    gm8 = mats_ref[R_GM8:R_GM8 + 8, 0:8]                         # (8, 8)
    pw1_bd = mats_ref[R_PW1_BD:R_PW1_BD + 2 * EXPAND, 0:8]       # (32, 8)
    fnn_wv = mats_ref[R_FNN_WV:R_FNN_WV + HID, 0:DIM]            # (2, 4)
    gm4 = gm8[0:DIM, 0:DIM]                                      # (4, 4) all 1/DIM

    # ----- pre-broadcast vectors: (rows, Bt) — no in-kernel lane splats -----
    def vec(r, n):
        return vecs_ref[r:r + n, :]
    stem_b = vec(V_STEM_B, 8)
    stem_ln_g = vec(V_STEM_LN_G, 8)
    stem_ln_b = vec(V_STEM_LN_B, 8)
    dw_a = vec(V_DW_A, 8)
    dw_b_tap = vec(V_DW_B, 8)
    dw_bias = vec(V_DW_BIAS, 8)
    blk_ln_g = vec(V_BLK_LN_G, 8)
    blk_ln_b = vec(V_BLK_LN_B, 8)
    pw2_b = vec(V_PW2_B, 8)
    pw1_b = vec(V_PW1_B, 2 * EXPAND)
    grn_g = vec(V_GRN_G, 2 * EXPAND)
    grn_b = vec(V_GRN_B, 2 * EXPAND)
    fin_ln_g = vec(V_FIN_LN_G, DIM)
    fin_ln_b = vec(V_FIN_LN_B, DIM)
    fnn_wo = vec(V_FNN_WO, HID)
    fnn_b = vec(V_FNN_B, HID)
    lcl_w0 = vec(V_LCL_W0, 1)
    lcl_w1 = vec(V_LCL_W1, 1)
    lcl_b = vec(V_LCL_B, 1)

    x = vis_ref[...]                                             # (32, Bt)
    other = other_ref[...]                                       # (1, Bt)

    # ----- CNN stem: Conv1d(k=4, s=4), both positions fused in one dot -----
    y = jnp.dot(stem_bd, x, preferred_element_type=f32) + stem_b  # (8, Bt)

    # per-position channel LayerNorm via the group-mean matmul (idle MXU slot)
    def group_ln(v, g, b):
        u = jnp.dot(gm8, v, preferred_element_type=f32)
        d = v - u
        var = jnp.dot(gm8, d * d, preferred_element_type=f32)
        return d * jax.lax.rsqrt(var + EPS) * g + b

    y = group_ln(y, stem_ln_g, stem_ln_b)                         # (8, Bt)

    # ----- ConvNeXt-V2 block: depthwise conv k=7, pad=3 over length-2 -------
    # only taps overlapping real data: t=0 uses (j=3)*y0+(j=4)*y1,
    #                                  t=1 uses (j=2)*y0+(j=3)*y1
    y_swap = jnp.concatenate([y[DIM:2 * DIM, :], y[0:DIM, :]], axis=0)
    z = dw_a * y + dw_b_tap * y_swap + dw_bias                    # (8, Bt)
    z = group_ln(z, blk_ln_g, blk_ln_b)

    # pointwise expand (block-diag) + relu
    h = jnp.dot(pw1_bd, z, preferred_element_type=f32) + pw1_b    # (32, Bt)
    h = jnp.maximum(h, 0.0)

    # GRN over the spatial axis (per expanded channel)
    top = h[0:EXPAND, :]
    bot = h[EXPAND:2 * EXPAND, :]
    gx = jnp.sqrt(top * top + bot * bot)                          # (16, Bt)
    inv = pl.reciprocal(jnp.mean(gx, axis=0, keepdims=True) + 1e-6, approx=True)
    nx = gx * inv                                                 # (16, Bt)
    h = grn_g * (h * jnp.concatenate([nx, nx], axis=0)) + grn_b + h

    # pointwise project (block-diag) + residual
    x1 = y + jnp.dot(pw2_bd, h, preferred_element_type=f32) + pw2_b   # (8, Bt)

    # global mean pool over the 2 positions + final channel LayerNorm
    feat = (x1[0:DIM, :] + x1[DIM:2 * DIM, :]) * (1.0 / L1)       # (4, Bt)
    u = jnp.dot(gm4, feat, preferred_element_type=f32)
    d = feat - u
    var = jnp.dot(gm4, d * d, preferred_element_type=f32)
    feat = d * jax.lax.rsqrt(var + EPS) * fin_ln_g + fin_ln_b     # (4, Bt)

    # ----- RNN ('fnn'): Linear(RNN_IN -> HID) + relu -----
    hid = jnp.dot(fnn_wv, feat, preferred_element_type=f32) + fnn_wo * other + fnn_b
    hid = jnp.maximum(hid, 0.0)                                   # (2, Bt)

    # ----- LCL + tanh (K=2: VPU broadcast-mul, no MXU push) -----
    action = jnp.tanh(lcl_b + lcl_w0 * hid[0:1, :] + lcl_w1 * hid[1:2, :])  # (1, Bt)

    # single packed, lane-dense store: row 0 = action, rows 1..2 = hidden
    out_ref[...] = jnp.concatenate([action, hid], axis=0)


def vis_to_kernel_layout(vis_b):
    """Producer-side layout contract: (B, C_IN, VIS_RES) channels-first ->
    (L1*K_STEM*C_IN, B) batch-minor.  Row index = t*K*C + j*C + c maps to
    vis[b, c, t*S_STEM + j].  In production the producer should emit this
    layout directly so no batch-minor transpose sits in the per-step path."""
    B = vis_b.shape[0]
    x = vis_b.reshape(B, C_IN, L1, K_STEM)
    return jnp.transpose(x, (2, 3, 1, 0)).reshape(VIS_ROWS, B)


def world_model_pallas(vis_feat, other_f, mats, vecs, *, block_b=512):
    """vis_feat: (VIS_ROWS, B) from vis_to_kernel_layout, other_f: (OTHER, B).
    Returns (action (B,), hidden (HID, B))  -- hidden is batch-minor."""
    assert block_b % 128 == 0
    assert vis_feat.shape[0] == VIS_ROWS and other_f.shape[0] == OTHER
    assert mats.shape == (MAT_ROWS, MAT_COLS)
    assert vecs.shape == (VEC_ROWS, block_b), "vecs slab packed for a different block_b"
    B = vis_feat.shape[1]

    nb = -(-B // block_b)                 # ceil-div
    if nb > 1 and nb % 2 == 1:
        nb += 1                           # even grid so v7x's 2 TCs stay balanced
    Bp = nb * block_b
    if Bp != B:                           # masked tail -> zero-padded tail block
        vis_feat = jnp.pad(vis_feat, ((0, 0), (0, Bp - B)))
        other_f = jnp.pad(other_f, ((0, 0), (0, Bp - B)))

    bytes_accessed = int((VIS_ROWS + OTHER + OUT_ROWS) * Bp * 4
                         + (MAT_ROWS * MAT_COLS + VEC_ROWS * block_b) * 4)
    out = pl.pallas_call(
        world_model_kernel,
        out_shape=jax.ShapeDtypeStruct((OUT_ROWS, Bp), jnp.float32),
        grid_spec=pltpu.PrefetchScalarGridSpec(
            num_scalar_prefetch=0,
            grid=(nb,),
            in_specs=[
                pl.BlockSpec((VIS_ROWS, block_b), lambda i: (0, i)),
                pl.BlockSpec((OTHER, block_b), lambda i: (0, i)),
                pl.BlockSpec((MAT_ROWS, MAT_COLS), lambda i: (0, 0)),   # resident
                pl.BlockSpec((VEC_ROWS, block_b), lambda i: (0, 0)),    # resident
            ],
            out_specs=pl.BlockSpec((OUT_ROWS, block_b), lambda i: (0, i)),
        ),
        compiler_params=pltpu.CompilerParams(
            dimension_semantics=("parallel",)),
        cost_estimate=pl.CostEstimate(flops=int(Bp) * 2600,
                                      transcendentals=int(Bp) * 40,
                                      bytes_accessed=bytes_accessed),
    )(vis_feat, other_f, mats, vecs)

    action = out[0, :B]                   # (B,)
    hidden = out[OUT:OUT_ROWS, :B]        # (HID, B), batch-minor (no transpose)
    return action, hidden


# ---------------------- deterministic parameter setup ----------------------
def init_params(key):
    """Mimics trunc_normal(std=0.02) weights / zero biases (synthetic),
    stored in the original PyTorch shapes."""
    ks = jax.random.split(key, 8)
    std = 0.02
    p = {}
    p["stem_w"] = std * jax.random.normal(ks[0], (DIM, C_IN, K_STEM), jnp.float32)
    p["stem_b"] = jnp.zeros((DIM,), jnp.float32)
    p["stem_ln_g"], p["stem_ln_b"] = jnp.ones((DIM,)), jnp.zeros((DIM,))
    p["dw_w"] = std * jax.random.normal(ks[1], (DIM, 1, K_DW), jnp.float32)
    p["dw_b"] = jnp.zeros((DIM,), jnp.float32)
    p["blk_ln_g"], p["blk_ln_b"] = jnp.ones((DIM,)), jnp.zeros((DIM,))
    p["pw1_w"] = std * jax.random.normal(ks[2], (EXPAND, DIM), jnp.float32)
    p["pw1_b"] = jnp.zeros((EXPAND,), jnp.float32)
    p["grn_g"] = std * jax.random.normal(ks[3], (EXPAND,), jnp.float32)
    p["grn_b"] = std * jax.random.normal(ks[4], (EXPAND,), jnp.float32)
    p["pw2_w"] = std * jax.random.normal(ks[5], (DIM, EXPAND), jnp.float32)
    p["pw2_b"] = jnp.zeros((DIM,), jnp.float32)
    p["fin_ln_g"], p["fin_ln_b"] = jnp.ones((DIM,)), jnp.zeros((DIM,))
    p["fnn_w"] = std * jax.random.normal(ks[6], (HID, RNN_IN), jnp.float32)
    p["fnn_b"] = jnp.zeros((HID,), jnp.float32)
    p["lcl_w"] = std * jax.random.normal(ks[7], (OUT, HID), jnp.float32)
    p["lcl_b"] = jnp.zeros((OUT,), jnp.float32)
    return p


def pack_params(p, *, block_b=512):
    """Pack parameters into (a) a compact 'mats' slab of MXU operands and
    (b) a 'vecs' slab with every per-channel vector pre-broadcast across the
    block_b lanes (so the kernel never does a lane splat)."""
    g = lambda k: np.asarray(p[k], np.float32)

    mats = np.zeros((MAT_ROWS, MAT_COLS), np.float32)
    stem_pk = np.transpose(g("stem_w"), (0, 2, 1)).reshape(DIM, K_STEM * C_IN)
    mats[R_STEM_BD + 0:R_STEM_BD + DIM, 0:16] = stem_pk
    mats[R_STEM_BD + DIM:R_STEM_BD + 2 * DIM, 16:32] = stem_pk
    pw2 = g("pw2_w")
    mats[R_PW2_BD + 0:R_PW2_BD + DIM, 0:16] = pw2
    mats[R_PW2_BD + DIM:R_PW2_BD + 2 * DIM, 16:32] = pw2
    gm = np.zeros((8, 8), np.float32)
    gm[0:DIM, 0:DIM] = 1.0 / DIM
    gm[DIM:2 * DIM, DIM:2 * DIM] = 1.0 / DIM
    mats[R_GM8:R_GM8 + 8, 0:8] = gm
    pw1 = g("pw1_w")
    mats[R_PW1_BD + 0:R_PW1_BD + EXPAND, 0:DIM] = pw1
    mats[R_PW1_BD + EXPAND:R_PW1_BD + 2 * EXPAND, DIM:2 * DIM] = pw1
    mats[R_FNN_WV:R_FNN_WV + HID, 0:DIM] = g("fnn_w")[:, :DIM]

    vecs = np.zeros((VEC_ROWS, block_b), np.float32)

    def bc(v):                     # (n,) -> (n, block_b) lane-broadcast
        v = np.asarray(v, np.float32).reshape(-1, 1)
        return np.broadcast_to(v, (v.shape[0], block_b))

    def stk2(v):                   # per-channel vector stacked over the 2 positions
        v = np.asarray(v, np.float32)
        return np.concatenate([v, v])

    dw = g("dw_w")[:, 0, :]        # (DIM, K_DW)
    vecs[V_STEM_B:V_STEM_B + 8] = bc(stk2(p["stem_b"]))
    vecs[V_STEM_LN_G:V_STEM_LN_G + 8] = bc(stk2(p["stem_ln_g"]))
    vecs[V_STEM_LN_B:V_STEM_LN_B + 8] = bc(stk2(p["stem_ln_b"]))
    vecs[V_DW_A:V_DW_A + 8] = bc(np.concatenate([dw[:, 3], dw[:, 3]]))
    vecs[V_DW_B:V_DW_B + 8] = bc(np.concatenate([dw[:, 4], dw[:, 2]]))
    vecs[V_DW_BIAS:V_DW_BIAS + 8] = bc(stk2(p["dw_b"]))
    vecs[V_BLK_LN_G:V_BLK_LN_G + 8] = bc(stk2(p["blk_ln_g"]))
    vecs[V_BLK_LN_B:V_BLK_LN_B + 8] = bc(stk2(p["blk_ln_b"]))
    vecs[V_PW2_B:V_PW2_B + 8] = bc(stk2(p["pw2_b"]))
    vecs[V_PW1_B:V_PW1_B + 2 * EXPAND] = bc(stk2(p["pw1_b"]))
    vecs[V_GRN_G:V_GRN_G + 2 * EXPAND] = bc(stk2(p["grn_g"]))
    vecs[V_GRN_B:V_GRN_B + 2 * EXPAND] = bc(stk2(p["grn_b"]))
    vecs[V_FIN_LN_G:V_FIN_LN_G + DIM] = bc(p["fin_ln_g"])
    vecs[V_FIN_LN_B:V_FIN_LN_B + DIM] = bc(p["fin_ln_b"])
    vecs[V_FNN_WO:V_FNN_WO + HID] = bc(g("fnn_w")[:, DIM])
    vecs[V_FNN_B:V_FNN_B + HID] = bc(p["fnn_b"])
    vecs[V_LCL_W0:V_LCL_W0 + 1] = bc(g("lcl_w")[:, 0])
    vecs[V_LCL_W1:V_LCL_W1 + 1] = bc(g("lcl_w")[:, 1])
    vecs[V_LCL_B:V_LCL_B + 1] = bc(p["lcl_b"])
    return jnp.asarray(mats), jnp.asarray(vecs)


# ------------------- independent pure-JAX reference path -------------------
def reference_forward(p, vis_b, other_b):
    """Batched reference in the PyTorch layout (NCL, torch param shapes),
    built with einsums / explicit padding — a different code path from the
    fused, stacked, channels-on-sublanes Pallas kernel."""
    def ln_last(x, g, b):
        u = jnp.mean(x, axis=-1, keepdims=True)
        d = x - u
        v = jnp.mean(d * d, axis=-1, keepdims=True)
        return d * jax.lax.rsqrt(v + EPS) * g + b

    B = vis_b.shape[0]
    xw = vis_b.reshape(B, C_IN, L1, K_STEM)
    y = jnp.einsum('bclj,dcj->bld', xw, p["stem_w"]) + p["stem_b"]
    y = ln_last(y, p["stem_ln_g"], p["stem_ln_b"])

    ypad = jnp.pad(y, ((0, 0), (P_DW, P_DW), (0, 0)))
    z = jnp.zeros_like(y)
    for j in range(K_DW):
        z = z + ypad[:, j:j + L1, :] * p["dw_w"][:, 0, j][None, None, :]
    z = z + p["dw_b"]

    z = ln_last(z, p["blk_ln_g"], p["blk_ln_b"])
    h1 = jnp.einsum('bld,ed->ble', z, p["pw1_w"]) + p["pw1_b"]
    h1 = jnp.maximum(h1, 0.0)
    gx = jnp.sqrt(jnp.sum(h1 * h1, axis=1, keepdims=True))
    nx = gx / (jnp.mean(gx, axis=-1, keepdims=True) + 1e-6)
    h1 = p["grn_g"] * (h1 * nx) + p["grn_b"] + h1
    h2 = jnp.einsum('ble,de->bld', h1, p["pw2_w"]) + p["pw2_b"]
    x1 = y + h2

    feat = ln_last(jnp.mean(x1, axis=1), p["fin_ln_g"], p["fin_ln_b"])
    rnn_in = jnp.concatenate([feat, other_b], axis=1)
    hid = jnp.maximum(rnn_in @ p["fnn_w"].T + p["fnn_b"], 0.0)
    action = jnp.tanh(hid @ p["lcl_w"].T + p["lcl_b"])
    return action[:, 0], hid


if __name__ == "__main__":
    key = jax.random.PRNGKey(0)
    kp, kv, ko = jax.random.split(key, 3)

    params = init_params(kp)
    BLOCK_B = 512                         # sweepable; 512-2048 all fit VMEM easily
    mats, vecs = pack_params(params, block_b=BLOCK_B)

    B = 1024                              # independent agents; grid = 2 (even, v7x)
    # each agent's inputs exactly as torch sees them (before its unsqueeze(0)):
    # vis_input: (C_IN=4, VIS_RES=8) channels-first, other_input: (OTHER,)
    vis_b = jax.random.normal(kv, (B, C_IN, VIS_RES), jnp.float32)
    other_b = jax.random.normal(ko, (B, OTHER), jnp.float32)
    # hidden_in would be zeros(B, HID); the 'fnn' RNN path ignores it.

    # producer-side layout contract (done once, outside the kernel's hot path)
    vis_feat = vis_to_kernel_layout(vis_b)        # (32, B)
    other_f = other_b.T                           # (1, B) — trivial for OTHER=1

    action, hidden = world_model_pallas(vis_feat, other_f, mats, vecs,
                                        block_b=BLOCK_B)
    jax.block_until_ready((action, hidden))

    ref_action, ref_hidden = reference_forward(params, vis_b, other_b)
    np.testing.assert_allclose(np.asarray(action), np.asarray(ref_action),
                               rtol=1e-3, atol=1e-5)
    np.testing.assert_allclose(np.asarray(hidden), np.asarray(ref_hidden).T,
                               rtol=1e-3, atol=1e-5)

    _scalar_action0 = float(np.asarray(action)[0])   # == torch action for agent 0
    print("KERNEL_OK")
</pallas_src>

<mosaic_0001>
module attributes {stable_mosaic.version = 11 : i64} {
  func.func @world_model_kernel(%arg0: i32, %arg1: memref<32x512xf32, #tpu.memory_space<vmem>>, %arg2: memref<1x512xf32, #tpu.memory_space<vmem>>, %arg3: memref<64x128xf32, #tpu.memory_space<vmem>>, %arg4: memref<184x512xf32, #tpu.memory_space<vmem>>, %arg5: memref<3x512xf32, #tpu.memory_space<vmem>>) attributes {dimension_semantics = [#tpu.dimension_semantics<parallel>], iteration_bounds = array<i64: 2>, scalar_prefetch = 0 : i64, scratch_operands = 0 : i64, tpu.core_type = #tpu.core_type<tc>, window_params = [{transform_indices = @transform_0, window_bounds = array<i64: 32, 512>}, {transform_indices = @transform_1, window_bounds = array<i64: 1, 512>}, {pipeline_mode = #tpu.pipeline_mode<synchronous>, transform_indices = @transform_2, window_bounds = array<i64: 64, 128>}, {pipeline_mode = #tpu.pipeline_mode<synchronous>, transform_indices = @transform_3, window_bounds = array<i64: 184, 512>}, {transform_indices = @transform_4, window_bounds = array<i64: 3, 512>}]} {
    %c0 = arith.constant 0 : index
    %c0_0 = arith.constant 0 : index
    %0 = vector.load %arg3[%c0, %c0_0] : memref<64x128xf32, #tpu.memory_space<vmem>>, vector<8x32xf32>
    %c8 = arith.constant 8 : index
    %c0_1 = arith.constant 0 : index
    %1 = vector.load %arg3[%c8, %c0_1] : memref<64x128xf32, #tpu.memory_space<vmem>>, vector<8x32xf32>
    %c16 = arith.constant 16 : index
    %c0_2 = arith.constant 0 : index
    %2 = vector.load %arg3[%c16, %c0_2] : memref<64x128xf32, #tpu.memory_space<vmem>>, vector<8x8xf32>
    %c24 = arith.constant 24 : index
    %c0_3 = arith.constant 0 : index
    %3 = vector.load %arg3[%c24, %c0_3] : memref<64x128xf32, #tpu.memory_space<vmem>>, vector<32x8xf32>
    %c56 = arith.constant 56 : index
    %c0_4 = arith.constant 0 : index
    %4 = vector.load %arg3[%c56, %c0_4] : memref<64x128xf32, #tpu.memory_space<vmem>>, vector<2x4xf32>
    %5 = vector.extract_strided_slice %2 {offsets = [0, 0], sizes = [4, 4], strides = [1, 1]} : vector<8x8xf32> to vector<4x4xf32>
    %c0_5 = arith.constant 0 : index
    %c0_6 = arith.constant 0 : index
    %6 = vector.load %arg4[%c0_5, %c0_6] : memref<184x512xf32, #tpu.memory_space<vmem>>, vector<8x512xf32>
    %c8_7 = arith.constant 8 : index
    %c0_8 = arith.constant 0 : index
    %7 = vector.load %arg4[%c8_7, %c0_8] : memref<184x512xf32, #tpu.memory_space<vmem>>, vector<8x512xf32>
    %c16_9 = arith.constant 16 : index
    %c0_10 = arith.constant 0 : index
    %8 = vector.load %arg4[%c16_9, %c0_10] : memref<184x512xf32, #tpu.memory_space<vmem>>, vector<8x512xf32>
    %c24_11 = arith.constant 24 : index
    %c0_12 = arith.constant 0 : index
    %9 = vector.load %arg4[%c24_11, %c0_12] : memref<184x512xf32, #tpu.memory_space<vmem>>, vector<8x512xf32>
    %c32 = arith.constant 32 : index
    %c0_13 = arith.constant 0 : index
    %10 = vector.load %arg4[%c32, %c0_13] : memref<184x512xf32, #tpu.memory_space<vmem>>, vector<8x512xf32>
    %c40 = arith.constant 40 : index
    %c0_14 = arith.constant 0 : index
    %11 = vector.load %arg4[%c40, %c0_14] : memref<184x512xf32, #tpu.memory_space<vmem>>, vector<8x512xf32>
    %c48 = arith.constant 48 : index
    %c0_15 = arith.constant 0 : index
    %12 = vector.load %arg4[%c48, %c0_15] : memref<184x512xf32, #tpu.memory_space<vmem>>, vector<8x512xf32>
    %c56_16 = arith.constant 56 : index
    %c0_17 = arith.constant 0 : index
    %13 = vector.load %arg4[%c56_16, %c0_17] : memref<184x512xf32, #tpu.memory_space<vmem>>, vector<8x512xf32>
    %c64 = arith.constant 64 : index
    %c0_18 = arith.constant 0 : index
    %14 = vector.load %arg4[%c64, %c0_18] : memref<184x512xf32, #tpu.memory_space<vmem>>, vector<8x512xf32>
    %c72 = arith.constant 72 : index
    %c0_19 = arith.constant 0 : index
    %15 = vector.load %arg4[%c72, %c0_19] : memref<184x512xf32, #tpu.memory_space<vmem>>, vector<32x512xf32>
    %c104 = arith.constant 104 : index
    %c0_20 = arith.constant 0 : index
    %16 = vector.load %arg4[%c104, %c0_20] : memref<184x512xf32, #tpu.memory_space<vmem>>, vector<32x512xf32>
    %c136 = arith.constant 136 : index
    %c0_21 = arith.constant 0 : index
    %17 = vector.load %arg4[%c136, %c0_21] : memref<184x512xf32, #tpu.memory_space<vmem>>, vector<32x512xf32>
    %c168 = arith.constant 168 : index
    %c0_22 = arith.constant 0 : index
    %18 = vector.load %arg4[%c168, %c0_22] : memref<184x512xf32, #tpu.memory_space<vmem>>, vector<4x512xf32>
    %c172 = arith.constant 172 : index
    %c0_23 = arith.constant 0 : index
    %19 = vector.load %arg4[%c172, %c0_23] : memref<184x512xf32, #tpu.memory_space<vmem>>, vector<4x512xf32>
    %c176 = arith.constant 176 : index
    %c0_24 = arith.constant 0 : index
    %20 = vector.load %arg4[%c176, %c0_24] : memref<184x512xf32, #tpu.memory_space<vmem>>, vector<2x512xf32>
    %c178 = arith.constant 178 : index
    %c0_25 = arith.constant 0 : index
    %21 = vector.load %arg4[%c178, %c0_25] : memref<184x512xf32, #tpu.memory_space<vmem>>, vector<2x512xf32>
    %c180 = arith.constant 180 : index
    %c0_26 = arith.constant 0 : index
    %22 = vector.load %arg4[%c180, %c0_26] : memref<184x512xf32, #tpu.memory_space<vmem>>, vector<1x512xf32>
    %c181 = arith.constant 181 : index
    %c0_27 = arith.constant 0 : index
    %23 = vector.load %arg4[%c181, %c0_27] : memref<184x512xf32, #tpu.memory_space<vmem>>, vector<1x512xf32>
    %c182 = arith.constant 182 : index
    %c0_28 = arith.constant 0 : index
    %24 = vector.load %arg4[%c182, %c0_28] : memref<184x512xf32, #tpu.memory_space<vmem>>, vector<1x512xf32>
    %c0_29 = arith.constant 0 : index
    %c0_30 = arith.constant 0 : index
    %25 = vector.load %arg1[%c0_29, %c0_30] : memref<32x512xf32, #tpu.memory_space<vmem>>, vector<32x512xf32>
    %c0_31 = arith.constant 0 : index
    %c0_32 = arith.constant 0 : index
    %26 = vector.load %arg2[%c0_31, %c0_32] : memref<1x512xf32, #tpu.memory_space<vmem>>, vector<1x512xf32>
    %cst = arith.constant dense<0.000000e+00> : vector<8x512xf32>
    %27 = tpu.matmul %0, %25, %cst {dimension_numbers = #tpu.dot_dimension_numbers<[1], [0], [0], [1], [0, 0, 1, 1], [], []>} : vector<8x32xf32>, vector<32x512xf32>, vector<8x512xf32> -> vector<8x512xf32>
    %28 = arith.addf %27, %6 : vector<8x512xf32>
    %cst_33 = arith.constant dense<0.000000e+00> : vector<8x512xf32>
    %29 = tpu.matmul %2, %28, %cst_33 {dimension_numbers = #tpu.dot_dimension_numbers<[1], [0], [0], [1], [0, 0, 1, 1], [], []>} : vector<8x8xf32>, vector<8x512xf32>, vector<8x512xf32> -> vector<8x512xf32>
    %30 = arith.subf %28, %29 : vector<8x512xf32>
    %31 = arith.mulf %30, %30 : vector<8x512xf32>
    %cst_34 = arith.constant dense<0.000000e+00> : vector<8x512xf32>
    %32 = tpu.matmul %2, %31, %cst_34 {dimension_numbers = #tpu.dot_dimension_numbers<[1], [0], [0], [1], [0, 0, 1, 1], [], []>} : vector<8x8xf32>, vector<8x512xf32>, vector<8x512xf32> -> vector<8x512xf32>
    %cst_35 = arith.constant 9.99999997E-7 : f32
    %33 = vector.broadcast %cst_35 : f32 to vector<8x512xf32>
    %34 = arith.addf %32, %33 : vector<8x512xf32>
    %35 = math.rsqrt %34 : vector<8x512xf32>
    %36 = arith.mulf %30, %35 : vector<8x512xf32>
    %37 = arith.mulf %36, %7 : vector<8x512xf32>
    %38 = arith.addf %37, %8 : vector<8x512xf32>
    %39 = vector.extract_strided_slice %38 {offsets = [4, 0], sizes = [4, 512], strides = [1, 1]} : vector<8x512xf32> to vector<4x512xf32>
    %40 = vector.extract_strided_slice %38 {offsets = [0, 0], sizes = [4, 512], strides = [1, 1]} : vector<8x512xf32> to vector<4x512xf32>
    %41 = tpu.concatenate %39, %40 in 0 : vector<4x512xf32>, vector<4x512xf32> -> vector<8x512xf32>
    %42 = arith.mulf %9, %38 : vector<8x512xf32>
    %43 = arith.mulf %10, %41 : vector<8x512xf32>
    %44 = arith.addf %42, %43 : vector<8x512xf32>
    %45 = arith.addf %44, %11 : vector<8x512xf32>
    %cst_36 = arith.constant dense<0.000000e+00> : vector<8x512xf32>
    %46 = tpu.matmul %2, %45, %cst_36 {dimension_numbers = #tpu.dot_dimension_numbers<[1], [0], [0], [1], [0, 0, 1, 1], [], []>} : vector<8x8xf32>, vector<8x512xf32>, vector<8x512xf32> -> vector<8x512xf32>
    %47 = arith.subf %45, %46 : vector<8x512xf32>
    %48 = arith.mulf %47, %47 : vector<8x512xf32>
    %cst_37 = arith.constant dense<0.000000e+00> : vector<8x512xf32>
    %49 = tpu.matmul %2, %48, %cst_37 {dimension_numbers = #tpu.dot_dimension_numbers<[1], [0], [0], [1], [0, 0, 1, 1], [], []>} : vector<8x8xf32>, vector<8x512xf32>, vector<8x512xf32> -> vector<8x512xf32>
    %cst_38 = arith.constant 9.99999997E-7 : f32
    %50 = vector.broadcast %cst_38 : f32 to vector<8x512xf32>
    %51 = arith.addf %49, %50 : vector<8x512xf32>
    %52 = math.rsqrt %51 : vector<8x512xf32>
    %53 = arith.mulf %47, %52 : vector<8x512xf32>
    %54 = arith.mulf %53, %12 : vector<8x512xf32>
    %55 = arith.addf %54, %13 : vector<8x512xf32>
    %cst_39 = arith.constant dense<0.000000e+00> : vector<32x512xf32>
    %56 = tpu.matmul %3, %55, %cst_39 {dimension_numbers = #tpu.dot_dimension_numbers<[1], [0], [0], [1], [0, 0, 1, 1], [], []>} : vector<32x8xf32>, vector<8x512xf32>, vector<32x512xf32> -> vector<32x512xf32>
    %57 = arith.addf %56, %15 : vector<32x512xf32>
    %cst_40 = arith.constant 0.000000e+00 : f32
    %58 = vector.broadcast %cst_40 : f32 to vector<32x512xf32>
    %59 = arith.maximumf %57, %58 : vector<32x512xf32>
    %60 = vector.extract_strided_slice %59 {offsets = [0, 0], sizes = [16, 512], strides = [1, 1]} : vector<32x512xf32> to vector<16x512xf32>
    %61 = vector.extract_strided_slice %59 {offsets = [16, 0], sizes = [16, 512], strides = [1, 1]} : vector<32x512xf32> to vector<16x512xf32>
    %62 = arith.mulf %60, %60 : vector<16x512xf32>
    %63 = arith.mulf %61, %61 : vector<16x512xf32>
    %64 = arith.addf %62, %63 : vector<16x512xf32>
    %65 = math.sqrt %64 : vector<16x512xf32>
    %cst_41 = arith.constant dense<0.000000e+00> : vector<512xf32>
    %66 = vector.multi_reduction <add>, %65, %cst_41 [0] : vector<16x512xf32> to vector<512xf32>
    %67 = vector.shape_cast %66 : vector<512xf32> to vector<1x512xf32>
    %cst_42 = arith.constant 1.600000e+01 : f32
    %68 = vector.broadcast %cst_42 : f32 to vector<1x512xf32>
    %69 = arith.divf %67, %68 : vector<1x512xf32>
    %cst_43 = arith.constant 9.99999997E-7 : f32
    %70 = vector.broadcast %cst_43 : f32 to vector<1x512xf32>
    %71 = arith.addf %69, %70 : vector<1x512xf32>
    %72 = tpu.reciprocal %71 {approx = true} : vector<1x512xf32> -> vector<1x512xf32>
    %73 = vector.broadcast %72 : vector<1x512xf32> to vector<16x512xf32>
    %74 = arith.mulf %65, %73 : vector<16x512xf32>
    %75 = tpu.concatenate %74, %74 in 0 : vector<16x512xf32>, vector<16x512xf32> -> vector<32x512xf32>
    %76 = arith.mulf %59, %75 : vector<32x512xf32>
    %77 = arith.mulf %16, %76 : vector<32x512xf32>
    %78 = arith.addf %77, %17 : vector<32x512xf32>
    %79 = arith.addf %78, %59 : vector<32x512xf32>
    %cst_44 = arith.constant dense<0.000000e+00> : vector<8x512xf32>
    %80 = tpu.matmul %1, %79, %cst_44 {dimension_numbers = #tpu.dot_dimension_numbers<[1], [0], [0], [1], [0, 0, 1, 1], [], []>} : vector<8x32xf32>, vector<32x512xf32>, vector<8x512xf32> -> vector<8x512xf32>
    %81 = arith.addf %38, %80 : vector<8x512xf32>
    %82 = arith.addf %81, %14 : vector<8x512xf32>
    %83 = vector.extract_strided_slice %82 {offsets = [0, 0], sizes = [4, 512], strides = [1, 1]} : vector<8x512xf32> to vector<4x512xf32>
    %84 = vector.extract_strided_slice %82 {offsets = [4, 0], sizes = [4, 512], strides = [1, 1]} : vector<8x512xf32> to vector<4x512xf32>
    %85 = arith.addf %83, %84 : vector<4x512xf32>
    %cst_45 = arith.constant 5.000000e-01 : f32
    %86 = vector.broadcast %cst_45 : f32 to vector<4x512xf32>
    %87 = arith.mulf %85, %86 : vector<4x512xf32>
    %cst_46 = arith.constant dense<0.000000e+00> : vector<4x512xf32>
    %88 = tpu.matmul %5, %87, %cst_46 {dimension_numbers = #tpu.dot_dimension_numbers<[1], [0], [0], [1], [0, 0, 1, 1], [], []>} : vector<4x4xf32>, vector<4x512xf32>, vector<4x512xf32> -> vector<4x512xf32>
    %89 = arith.subf %87, %88 : vector<4x512xf32>
    %90 = arith.mulf %89, %89 : vector<4x512xf32>
    %cst_47 = arith.constant dense<0.000000e+00> : vector<4x512xf32>
    %91 = tpu.matmul %5, %90, %cst_47 {dimension_numbers = #tpu.dot_dimension_numbers<[1], [0], [0], [1], [0, 0, 1, 1], [], []>} : vector<4x4xf32>, vector<4x512xf32>, vector<4x512xf32> -> vector<4x512xf32>
    %cst_48 = arith.constant 9.99999997E-7 : f32
    %92 = vector.broadcast %cst_48 : f32 to vector<4x512xf32>
    %93 = arith.addf %91, %92 : vector<4x512xf32>
    %94 = math.rsqrt %93 : vector<4x512xf32>
    %95 = arith.mulf %89, %94 : vector<4x512xf32>
    %96 = arith.mulf %95, %18 : vector<4x512xf32>
    %97 = arith.addf %96, %19 : vector<4x512xf32>
    %cst_49 = arith.constant dense<0.000000e+00> : vector<2x512xf32>
    %98 = tpu.matmul %4, %97, %cst_49 {dimension_numbers = #tpu.dot_dimension_numbers<[1], [0], [0], [1], [0, 0, 1, 1], [], []>} : vector<2x4xf32>, vector<4x512xf32>, vector<2x512xf32> -> vector<2x512xf32>
    %99 = vector.broadcast %26 : vector<1x512xf32> to vector<2x512xf32>
    %100 = arith.mulf %20, %99 : vector<2x512xf32>
    %101 = arith.addf %98, %100 : vector<2x512xf32>
    %102 = arith.addf %101, %21 : vector<2x512xf32>
    %cst_50 = arith.constant 0.000000e+00 : f32
    %103 = vector.broadcast %cst_50 : f32 to vector<2x512xf32>
    %104 = arith.maximumf %102, %103 : vector<2x512xf32>
    %105 = vector.extract_strided_slice %104 {offsets = [0, 0], sizes = [1, 512], strides = [1, 1]} : vector<2x512xf32> to vector<1x512xf32>
    %106 = arith.mulf %22, %105 : vector<1x512xf32>
    %107 = arith.addf %24, %106 : vector<1x512xf32>
    %108 = vector.extract_strided_slice %104 {offsets = [1, 0], sizes = [1, 512], strides = [1, 1]} : vector<2x512xf32> to vector<1x512xf32>
    %109 = arith.mulf %23, %108 : vector<1x512xf32>
    %110 = arith.addf %107, %109 : vector<1x512xf32>
    %111 = math.tanh %110 : vector<1x512xf32>
    %112 = tpu.concatenate %111, %104 in 0 : vector<1x512xf32>, vector<2x512xf32> -> vector<3x512xf32>
    %c0_51 = arith.constant 0 : index
    %c0_52 = arith.constant 0 : index
    %113 = vector.load %arg5[%c0_51, %c0_52] : memref<3x512xf32, #tpu.memory_space<vmem>>, vector<3x512xf32>
    tpu.vector_store %arg5[%c0_51, %c0_52], %112 {strides = array<i32>} : memref<3x512xf32, #tpu.memory_space<vmem>>, vector<3x512xf32>,
    return
  }
  func.func @transform_0(%arg0: i32) -> (i32, i32) {
    %c0_i32 = arith.constant 0 : i32
    %c0_i32_0 = arith.constant 0 : i32
    return %c0_i32, %arg0 : i32, i32
  }
  func.func @transform_1(%arg0: i32) -> (i32, i32) {
    %c0_i32 = arith.constant 0 : i32
    %c0_i32_0 = arith.constant 0 : i32
    return %c0_i32, %arg0 : i32, i32
  }
  func.func @transform_2(%arg0: i32) -> (i32, i32) {
    %c0_i32 = arith.constant 0 : i32
    %c0_i32_0 = arith.constant 0 : i32
    %c0_i32_1 = arith.constant 0 : i32
    return %c0_i32, %c0_i32_0 : i32, i32
  }
  func.func @transform_3(%arg0: i32) -> (i32, i32) {
    %c0_i32 = arith.constant 0 : i32
    %c0_i32_0 = arith.constant 0 : i32
    %c0_i32_1 = arith.constant 0 : i32
    return %c0_i32, %c0_i32_0 : i32, i32
  }
  func.func @transform_4(%arg0: i32) -> (i32, i32) {
    %c0_i32 = arith.constant 0 : i32
    %c0_i32_0 = arith.constant 0 : i32
    return %c0_i32, %arg0 : i32, i32
  }
}

</mosaic_0001>

<bundles_post_ra>
// kernel: tpu_custom_call.1
= control target key start
LH: loop header
LB: loop body
LE: loop exit
PB: predicated region body
PF: predicated region fallthrough
CT: control target
= control target key end

     0   :  { %s3606_s0 = inlined_call_operand.hbm [shape: f32[32,1024], index: 0, kind: input, shape index: {}]   ;;  %s3607_s1 = inlined_call_operand.hbm [shape: f32[1,1024], index: 1, kind: input, shape index: {}]   ;;  %s3608_s2 = inlined_call_operand.hbm [shape: f32[64,128], index: 2, kind: input, shape index: {}]   ;;  %s3609_s3 = inlined_call_operand.hbm [shape: f32[184,512], index: 3, kind: input, shape index: {}]   ;;  %s3610_s4 = inlined_call_operand.hbm [shape: f32[3,1024], index: 4, kind: output, shape index: {}]  }
   0x1   :  { %3616 = sst [smem:[#allocation16_spill]] %s3606_s0 }
   0x2   :  { %3617 = sst [smem:[#allocation17_spill]] %s3608_s2 }
   0x3   :  { %3618 = sst [smem:[#allocation18_spill]] %s3609_s3 }
   0x4   :  { %9 = vsyncpa [#allocation3], 0 }
   0x5   :  { %11 = vsyncpa [#allocation3 + $0x1], 0 }
   0x6   :  { %12 = vsyncpa [#allocation6], 0 }
   0x7   :  { %14 = vsyncpa [#allocation6 + $0x1], 0 }
   0x8   :  { %15 = vsyncpa [#allocation9], 0 }
   0x9   :  { %16 = vsyncpa [#allocation4], 0 }
   0xa   :  { %18 = vsyncpa [#allocation4 + $0x1], 0  ;;  %s3009_s15 = smov 0   ;;  %s3011_s16 = smov 0  }
   0xb   :  { %s3013_s17 = smov 0   ;;  %s3015_s18 = smov 0  }
   0xc LB: > { %s3030_s19 = sadd.s32 4294967295, %s2970_s18   ;;  %s2551_s20 = sadd.s32 4294967294, %s2970_s18   ;;  %s2970_s18 = sphi %s3015_s18, %s3644_s18   ;;  %s2966_s17 = sphi %s3013_s17, %s3643_s17   ;;  %s2962_s16 = sphi %s3011_s16, %s3642_s16   ;;  %s2958_s15 = sphi %s3009_s15, %s3641_s15  }
   0xd   : > { %s3034_s21 = sadd.s32 1, %s2970_s18   ;;  %s31_s22 = sadd.s32 1, %s2966_s17 }
   0xe   : > { %s28_s23 = ssub.s32 %s2970_s18, %s3034_s21  ;;  %p38_p0 = scmp.ne.s32.totalorder %s2966_s17, %s2962_s16 }
   0xf   : > { %p29_p1 = scmp.eq.s32.totalorder %s28_s23, 0  ;;  %p39_p2 = scmp.eq.s32.totalorder %s2970_s18, 0 }
  0x10   : > { %p44_p3 = scmp.ne.s32.totalorder %s2962_s16, %s2958_s15  ;;  %p3611_p4 = scmp.eq.s32.totalorder %s3030_s19, 0 }
  0x11   : > { %s3046_s24 = scalar_select %p29_p1, %s2966_s17, %s31_s22  }
  0x12   : > { %p3048_p5 = por %p39_p2, %p38_p0  ;;  %p3054_p6 = por %p3611_p4, %p44_p3 }
  0x13   : > { %p136_p7 = scmp.eq.s32.totalorder %s3030_s19, 1  ;;  %p142_p8 = scmp.eq.s32.totalorder %s2551_s20, 1 }
  0x14   : > { %s3619_s25 = scalar_select %p3048_p5, 1, 0 }
  0x15   : > { %s3620_s26 = scalar_select %p3054_p6, 1, 0 }
  0x16   : > { %p2552_p9 = scmp.ge.s32.totalorder %s2970_s18, 1  ;;  %p149_p10 = scmp.lt.s32.totalorder %s2970_s18, 3 }
  0x17   : > { %p3061_p11 = por %p136_p7, %p38_p0  ;;  %p3065_p12 = por %p142_p8, %p44_p3 }
  0x18   : > { %p3069_p13 = pnand %p2552_p9, %p149_p10  ;;  %s2972_s30 = smov [#allocation7]  }
  0x19   : > { %s3621_s27 = scalar_select %p3061_p11, 1, 0 }
  0x1a   : > { %s3622_s28 = scalar_select %p3065_p12, 1, 0 }
  0x1b   : > { %s3623_s29 = scalar_select %p3069_p13, 1, 0 }
  0x1c   : > { %p2660_p1 = pneg %p3069_p13  ;;  %s161_s5 = sshll.u32 %s2972_s30, 4  ;;  %s162_s5 = int_to_ptr.vmem [resolvable:$true] %s161_s5 }
  0x1d   : > { %s2973_s7 = smov [#allocation8]   ;;  %s3625_s2 = sld [smem:[#allocation17_spill]] }
  0x1e   : > { %p3077_p2 = pnand %p2660_p1, %p3611_p4  ;;  %s174_s8 = sshll.u32 %s2973_s7, 4  ;;  %s175_s8 = int_to_ptr.vmem [resolvable:$true] %s174_s8 }
  0x20   : > { %p2778_p8 = pneg %p3077_p2 }
  0x23   : > { %s2776_s11 = scalar_lea.hbm %s3625_s2, 1024 }
  0x24   : > { %p2777_p7 = scmp.ne.s32.totalorder %s3625_s2, %s2776_s11  ;;  %p2783_p1 = scmp.lt.u32.totalorder %s2776_s11, %s3625_s2 }
  0x26   : > { %p2779_p9 = pnand %p2778_p8, %p2777_p7 }
  0x28   : > { %p2780_p10 = pneg %p2779_p9 }
  0x2a   : > { %p2785_p0 = pnand %p2783_p1, %p2780_p10 }
  0x2c   : > { %2788 = shalt.err (!%p2785_p0)
}
  0x2d   : > { %s2789_s22 = scalar_lea.vmem %s162_s5, 1024  ;;  %p2797_p11 = scmp.lt.s32.totalorder %s162_s5, %s162_s5 }
  0x2e   : > { %p2790_p4 = scmp.ne.s32.totalorder %s162_s5, %s2789_s22  ;;  %p2798_p6 = scmp.lt.s32.totalorder %s2789_s22, %s2789_s22 }
  0x30   : > { %p2792_p3 = pnand %p2790_p4, %p2778_p8  ;;  %p2799_p13 = por %p2798_p6, %p2797_p11 }
  0x32   : > { %p2793_p12 = pneg %p2792_p3 }
  0x34   : > { %p2800_p5 = pnand %p2799_p13, %p2793_p12 }
  0x36   : > { %2803 = shalt.err (!%p2800_p5)
}
  0x37   : > { %s2974_s23 = smov 128   ;;  %s2975_s30 = smov 8  }
  0x38   : > { %2663 = dma.hbm_to_vmem [thread:$0]  (!%p3077_p2), %s3625_s2, 1024, %s162_s5, [#allocation6], %s2974_s23, %s2974_s23, %s2975_s30  }
  0x39   : > { %p3626_p0 = scmp.ne.s32.totalorder %s3619_s25, 0  ;;  %p3627_p4 = scmp.lt.s32.totalorder %s2970_s18, 2 }
  0x3a   : > { %s3114_s11 = sand.u32 1, %s2966_s17   ;;  %s3629_s3 = sld [smem:[#allocation18_spill]] }
  0x3b   : > { %p3109_p3 = pnand %p3627_p4, %p3626_p0 }
  0x3d   : > { %s3628_s10 = scalar_select %p3109_p3, 1, 0 }
  0x40   : > { %s2804_s14 = scalar_lea.hbm %s3629_s3, 11776 }
  0x41   : > { %p2805_p5 = scmp.ne.s32.totalorder %s3629_s3, %s2804_s14  ;;  %p2811_p12 = scmp.lt.u32.totalorder %s2804_s14, %s3629_s3 }
  0x43   : > { %p2807_p6 = pnand %p2805_p5, %p2778_p8 }
  0x45   : > { %p2808_p11 = pneg %p2807_p6 }
  0x47   : > { %p2813_p13 = pnand %p2811_p12, %p2808_p11 }
  0x49   : > { %2816 = shalt.err (!%p2813_p13)
}
  0x4a   : > { %s2817_s23 = scalar_lea.vmem %s175_s8, 11776  ;;  %p2825_p1 = scmp.lt.s32.totalorder %s175_s8, %s175_s8 }
  0x4b   : > { %p2818_p7 = scmp.ne.s32.totalorder %s175_s8, %s2817_s23  ;;  %p2826_p0 = scmp.lt.s32.totalorder %s2817_s23, %s2817_s23 }
  0x4d   : > { %p2820_p9 = pnand %p2818_p7, %p2778_p8  ;;  %p2827_p4 = por %p2826_p0, %p2825_p1 }
  0x4f   : > { %p2821_p10 = pneg %p2820_p9 }
  0x51   : > { %p2828_p3 = pnand %p2827_p4, %p2821_p10 }
  0x53   : > { %2831 = shalt.err (!%p2828_p3)
}
  0x54   : > { %s2976_s30 = smov 512   ;;  %s2977_s7 = smov 32  }
  0x55   : > { %2666 = dma.hbm_to_vmem [thread:$0]  (!%p3077_p2), %s3629_s3, 11776, %s175_s8, [#allocation9], %s2976_s30, %s2976_s30, %s2977_s7  }
  0x56   : > { %s2556_s13 = sshll.u32 %s3114_s11, 7  ;;  %s2611_s14 = sshll.u32 %s2970_s18, 9 }
  0x57   : > { %s3630_s0 = sld [smem:[#allocation16_spill]]  ;;  %s192_s5 = scalar_lea.vmem [#allocation2], %s2556_s13 }
  0x58   : > { %s199_s6 = sshll.u32 %s192_s5, 4  ;;  %s189_s23 = scalar_lea.sflag [#allocation3], %s3114_s11  ;;  %s3146_s6 = int_to_ptr.vmem [resolvable:$true] %s199_s6 }
  0x59   : > { %p3631_p3 = scmp.ne.s32.totalorder %s3628_s10, 0 }
  0x5b   : > { %p2834_p2 = pneg %p3631_p3 }
  0x5d   : > { %s3144_s25 = scalar_lea.hbm %s3630_s0, %s2611_s14  ;;  %s2837_s12 = scalar_lea.hbm %s3630_s0, 4096 }
  0x5e   : > { %s2832_s2 = scalar_lea.hbm %s3144_s25, 2048  ;;  %p2838_p11 = scmp.lt.u32.totalorder %s3144_s25, %s3630_s0 }
  0x5f   : > { %p2833_p8 = scmp.ne.s32.totalorder %s3144_s25, %s2832_s2  ;;  %p2839_p12 = scmp.lt.u32.totalorder %s2837_s12, %s2832_s2 }
  0x60   : > { %p2841_p7 = scmp.lt.u32.totalorder %s2832_s2, %s3144_s25 }
  0x61   : > { %p2835_p5 = pnand %p2834_p2, %p2833_p8  ;;  %p2840_p13 = por %p2839_p12, %p2838_p11 }
  0x63   : > { %p2836_p6 = pneg %p2835_p5  ;;  %p2842_p9 = por %p2841_p7, %p2840_p13 }
  0x65   : > { %p2843_p10 = pnand %p2842_p9, %p2836_p6 }
  0x67   : > { %2846 = shalt.err (!%p2843_p10)
}
  0x68   : > { %s2847_s13 = scalar_lea.vmem %s3146_s6, 2048  ;;  %s2978_s22 = smov [#allocation2]  }
  0x69   : > { %p2848_p1 = scmp.ne.s32.totalorder %s3146_s6, %s2847_s13  ;;  %s2852_s5 = sshll.u32 %s2978_s22, 4  ;;  %s2853_s5 = int_to_ptr.vmem [resolvable:$false] %s2852_s5 }
  0x6a   : > { %s2854_s8 = scalar_lea.vmem %s2853_s5, 4096  ;;  %p2855_p8 = scmp.lt.s32.totalorder %s3146_s6, %s2853_s5 }
  0x6b   : > { %p2850_p0 = pnand %p2848_p1, %p2834_p2  ;;  %p2856_p5 = scmp.lt.s32.totalorder %s2854_s8, %s2847_s13 }
  0x6d   : > { %p2851_p4 = pneg %p2850_p0  ;;  %p2857_p11 = por %p2856_p5, %p2855_p8 }
  0x6f   : > { %p2858_p12 = pnand %p2857_p11, %p2851_p4 }
  0x71   : > { %2861 = shalt.err (!%p2858_p12)
}
  0x72   : > { %s2979_s2 = smov 1024   ;;  %s209_s9 = sand.u32 1, %s2970_s18  }
  0x73   : > { %2670 = dma.hbm_to_vmem [thread:$0]  (!%p3631_p3), %s3144_s25, 2048, %s3146_s6, %s189_s23, %s2979_s2, %s2976_s30, %s2977_s7  }
  0x74   : > { %s2559_s12 = sshll.u32 %s3114_s11, 2  ;;  %s2612_s14 = sshll.u32 %s2970_s18, 6 }
  0x75   : > { %s213_s20 = scalar_lea.vmem [#allocation5], %s2559_s12  ;;  %s3184_s8 = scalar_lea.hbm %s3607_s1, %s2612_s14 }
  0x76   : > { %s221_s13 = sshll.u32 %s213_s20, 4  ;;  %s210_s0 = scalar_lea.sflag [#allocation6], %s209_s9  ;;  %s222_s13 = int_to_ptr.vmem [resolvable:$true] %s221_s13 }
  0x77   : > { %s2862_s3 = scalar_lea.hbm %s3184_s8, 64  ;;  %s2867_s7 = scalar_lea.hbm %s3607_s1, 128 }
  0x78   : > { %p2863_p6 = scmp.ne.s32.totalorder %s3184_s8, %s2862_s3  ;;  %p2868_p9 = scmp.lt.u32.totalorder %s3184_s8, %s3607_s1 }
  0x79   : > { %p2869_p10 = scmp.lt.u32.totalorder %s2867_s7, %s2862_s3  ;;  %p2871_p0 = scmp.lt.u32.totalorder %s2862_s3, %s3184_s8 }
  0x7a   : > { %p2865_p13 = pnand %p2863_p6, %p2834_p2 }
  0x7b   : > { %p2870_p1 = por %p2869_p10, %p2868_p9 }
  0x7c   : > { %p2866_p7 = pneg %p2865_p13 }
  0x7d   : > { %p2872_p4 = por %p2871_p0, %p2870_p1 }
  0x7f   : > { %p2873_p8 = pnand %p2872_p4, %p2866_p7 }
  0x81   : > { %2876 = shalt.err (!%p2873_p8)
}
  0x82   : > { %s2877_s23 = scalar_lea.vmem %s222_s13, 64  ;;  %s2980_s2 = smov [#allocation5]  }
  0x83   : > { %p2878_p5 = scmp.ne.s32.totalorder %s222_s13, %s2877_s23  ;;  %s2882_s9 = sshll.u32 %s2980_s2, 4  ;;  %s2883_s9 = int_to_ptr.vmem [resolvable:$false] %s2882_s9 }
  0x84   : > { %s2884_s12 = scalar_lea.vmem %s2883_s9, 128  ;;  %p2885_p6 = scmp.lt.s32.totalorder %s222_s13, %s2883_s9 }
  0x85   : > { %p2880_p11 = pnand %p2878_p5, %p2834_p2  ;;  %p2886_p13 = scmp.lt.s32.totalorder %s2884_s12, %s2877_s23 }
  0x87   : > { %p2881_p12 = pneg %p2880_p11  ;;  %p2887_p9 = por %p2886_p13, %p2885_p6 }
  0x89   : > { %p2888_p10 = pnand %p2887_p9, %p2881_p12 }
  0x8b   : > { %2891 = shalt.err (!%p2888_p10)
}
  0x8c   : > { %2673 = dma.hbm_to_vmem [thread:$0]  (!%p3631_p3), %s3184_s8, 64, %s222_s13, %s210_s0  }
  0x8d   : > { %p3632_p7 = scmp.ne.s32.totalorder %s3623_s29, 0 }
  0x8e   : > { %s3208_s3 = sand.u32 (!%p3632_p7), 1, %s2962_s16   ;;  %p3633_p2 = scmp.ne.s32.totalorder (!%p3632_p7), %s3620_s26, 0 }
  0x8f   : > { %230 = sbr.rel (%p3632_p7) target bundleno = 2553 (0x9f9), region = 36  ;;  %s2563_s14 = sshll.u32 (!%p3632_p7), %s3208_s3, 7 }
  0x90   : > { %s233_s20 = scalar_lea.sflag (!%p3632_p7), [#allocation3], %s3208_s3  ;;  %s3212_s22 = scalar_lea.vmem (!%p3632_p7), [#allocation2], %s2563_s14 }
  0x96   : > { %2937 = dma.done.wait (%p3633_p2), %s233_s20, 2048  }
  0x97   : > { %2939 = vsyncadd (%p3633_p2), %s233_s20, 4294965248  ;;  %s241_s0 = sand.u32 1, %s3030_s19   ;;  %s2564_s29 = sshll.u32 %s3208_s3, 2 }
  0x98   : > { %s242_s10 = scalar_lea.sflag [#allocation6], %s241_s0  ;;  %s3220_s13 = scalar_lea.vmem [#allocation5], %s2564_s29 }
  0x99   : > { %2941 = dma.done.wait (%p3633_p2), %s242_s10, 64  }
  0x9a   : > { %2943 = vsyncadd (%p3633_p2), %s242_s10, 4294967232  ;;  %p3634_p3 = scmp.eq.s32.totalorder %s3030_s19, 0 }
  0x9c   : > { %2945 = dma.done.wait (%p3634_p3), [#allocation6], 1024   ;;  %p3635_p1 = pmov %p3634_p3 }
  0x9e   : > { %2947 = vsyncadd (%p3635_p1), [#allocation6], 4294966272  ;;  %p3636_p0 = pmov %p3635_p1 }
  0xa0   : > { %2949 = dma.done.wait (%p3636_p0), [#allocation9], 11776   ;;  %p3637_p4 = pmov %p3636_p0 }
  0xa1   : > { %v2981_v0 = vmov 0.0   ;;  %v401_v1 = vld [vmem:[%s3212_s22 + $0x8] sm:$0xff]  ;;  %v403_v3 = vld [vmem:[%s3212_s22 + $0x18] sm:$0xff]  ;;  %v400_v6 = vld [vmem:[%s3212_s22] sm:$0xff]  ;;  %vm417_vm0 = vcmask 261120   ;;  %vm563_vm1 = vcmask 64512  }
  0xa2   : > { %2951 = vsyncadd (%p3637_p4), [#allocation9], 4294955520  ;;  %485 = vmatprep.mubr.f32.mxu0 %v2981_v0  ;;  %556 = vmatprep.mubr.f32.mxu1 %v2981_v0  ;;  %v405_v2 = vld [vmem:[%s3212_s22 + $0x28] sm:$0xff]  ;;  %v407_v5 = vld [vmem:[%s3212_s22 + $0x38] sm:$0xff]  ;;  %s2567_s26 = sshll.u32 %s3208_s3, 4  ;;  %s2613_s5 = sshll.u32 %s3030_s19, 8 }
  0xa3   : > { %v2614_v4 = vpack.c.bf16 %v405_v2, %v401_v1  ;;  %v404_v7 = vld [vmem:[%s3212_s22 + $0x20] sm:$0xff]  ;;  %v2622_v8 = vpack.c.bf16 %v407_v5, %v403_v3  ;;  %v402_v10 = vld [vmem:[%s3212_s22 + $0x10] sm:$0xff]  ;;  %v409_v12 = vld [vmem:[%s3212_s22 + $0x48] sm:$0xff]  ;;  %s282_s8 = scalar_lea.vmem [#allocation10], %s2567_s26  ;;  %s3562_s25 = scalar_lea.hbm %s3610_s4, %s2613_s5 }
  0xa4   : > { %v2616_v9 = vpack.c.bf16 %v404_v7, %v400_v6  ;;  %v406_v11 = vld [vmem:[%s3212_s22 + $0x30] sm:$0xff]  ;;  %v413_v14 = vld [vmem:[%s3212_s22 + $0x68] sm:$0xff]  ;;  %v411_v15 = vld [vmem:[%s3212_s22 + $0x58] sm:$0xff]  ;;  %s2439_s11 = sshll.u32 %s282_s8, 4  ;;  %s2425_s19 = scalar_lea.sflag [#allocation4], %s3208_s3  ;;  %s3564_s11 = int_to_ptr.vmem [resolvable:$true] %s2439_s11 }
  0xa5   : > { %2615 = vmatprep.subr.bf16.mxu0 %v2614_v4  ;;  %v2624_v13 = vpack.c.bf16 %v406_v11, %v402_v10  ;;  %v415_v16 = vld [vmem:[%s3212_s22 + $0x78] sm:$0xff]  ;;  %2623 = vmatprep.subr.bf16.mxu1 %v2622_v8  ;;  %v2618_v17 = vpack.c.bf16 %v413_v14, %v409_v12  ;;  %v408_v19 = vld [vmem:[%s3212_s22 + $0x40] sm:$0xff]  ;;  %v410_v21 = vld [vmem:[%s3212_s22 + $0x50] sm:$0xff]  ;;  %s2892_s6 = scalar_lea.vmem %s3564_s11, 256  ;;  %p3638_p5 = scmp.ne.s32.totalorder %s3621_s27, 0 }
  0xa6   : > { %2617 = vmatpush1.bf16.msra.mxu0 %v2616_v9  ;;  %v2626_v18 = vpack.c.bf16 %v415_v16, %v411_v15  ;;  %v412_v20 = vld [vmem:[%s3212_s22 + $0x60] sm:$0xff]  ;;  %v414_v23 = vld [vmem:[%s3212_s22 + $0x70] sm:$0xff]  ;;  %v286_v25 = vld [vmem:[#allocation7] sm:$0xff]  ;;  %p2893_p8 = scmp.ne.s32.totalorder %s3564_s11, %s2892_s6  ;;  %s2983_s23 = smov [#allocation10]  }
  0xa7   : > { %2625 = vmatpush1.bf16.msra.mxu1 %v2624_v13  ;;  %v2620_v22 = vpack.c.bf16 %v412_v20, %v408_v19  ;;  %2619 = vmatprep.subr.bf16.mxu0 %v2618_v17  ;;  %v2628_v24 = vpack.c.bf16 %v414_v23, %v410_v21  ;;  %v295_v26 = vld [vmem:[#allocation8 + $0x8] sm:$0xff]  ;;  %v294_v27 = vld [vmem:[#allocation8] sm:$0xff]  ;;  %v297_v29 = vld [vmem:[#allocation8 + $0x18] sm:$0xff]  ;;  %s2896_s2 = sshll.u32 %s2983_s23, 4  ;;  %s2897_s2 = int_to_ptr.vmem [resolvable:$false] %s2896_s2 }
  0xa8   : > { %2627 = vmatprep.subr.bf16.mxu1 %v2626_v18  ;;  %v296_v30 = vld [vmem:[#allocation8 + $0x10] sm:$0xff]  ;;  %v298_v60 = vld [vmem:[#allocation8 + $0x20] sm:$0xff]  ;;  %v299_v3 = vld [vmem:[#allocation8 + $0x28] sm:$0xff]  ;;  %p2894_p11 = pnand %p2893_p8, %p3638_p5  ;;  %s2898_s9 = scalar_lea.vmem %s2897_s2, 512 }
  0xa9   : > { %v3256_v37 = vld [vmem:[#allocation7 + $0x10] sm:$0xff]  ;;  %v302_v4 = vld [vmem:[#allocation8 + $0x40] sm:$0xff]  ;;  %v301_v8 = vld [vmem:[#allocation8 + $0x38] sm:$0xff]  ;;  %p2899_p6 = scmp.lt.s32.totalorder %s3564_s11, %s2897_s2  ;;  %p2900_p13 = scmp.lt.s32.totalorder %s2898_s9, %s2892_s6 }
  0xaa   : > { %2621 = vmatpush1.bf16.msra.mxu0 %v2620_v22  ;;  %v300_v63 = vld [vmem:[#allocation8 + $0x30] sm:$0xff]  ;;  %v303_v12 = vld [vmem:[#allocation8 + $0x48] sm:$0xff]  ;;  %v305_v14 = vld [vmem:[#allocation8 + $0x58] sm:$0xff]  ;;  %p2895_p12 = pneg %p2894_p11 }
  0xab   : > { %2629 = vmatpush1.bf16.msra.mxu1 %v2628_v24  ;;  %v304_v9 = vld [vmem:[#allocation8 + $0x50] sm:$0xff]  ;;  %v310_v17 = vld [vmem:[#allocation8 + $0x80] sm:$0xff]  ;;  %v307_v23 = vld [vmem:[#allocation8 + $0x68] sm:$0xff]  ;;  %p2901_p9 = por %p2900_p13, %p2899_p6 }
  0xac   : > { %v306_v20 = vld [vmem:[#allocation8 + $0x60] sm:$0xff]  ;;  %v312_v22 = vld [vmem:[#allocation8 + $0x90] sm:$0xff]  ;;  %v311_v24 = vld [vmem:[#allocation8 + $0x88] sm:$0xff] }
  0xad   : > { %2568 = vmatmul.mubr.msk.f32.vlgmr.msra.gmra.mrb[0].mxu0 %vm417_vm0, %v286_v25  ;;  %p2902_p10 = pnand %p2901_p9, %p2895_p12 }
  0xae   : > { %2569 = vmatmul.mubr.msk.f32.vlgmr.msra.gmra.mrb[0].mxu1 %vm417_vm0, %v286_v25  ;;  %631 = vmatprep.mubr.f32.mxu0 %v2981_v0 }
  0xaf   : > { %702 = vmatprep.mubr.f32.mxu1 %v2981_v0 }
 0x180   : > { %v487_v28 = vpop.f32.mrb[0].mxu0 }
 0x181   : > { %v558_v31 = vpop.f32.mrb[0].mxu1  ;;  %v489_v32 = vpop.f32.mrb[1].mxu0  ;;  %v488_v35 = vadd.f32 %v487_v28, %v294_v27 }
 0x182   : > { %v490_v33 = vadd.f32 %v489_v32, %v295_v26  ;;  %v560_v34 = vpop.f32.mrb[1].mxu1  ;;  %v559_v38 = vadd.f32 %v558_v31, %v296_v30  ;;  %v308_v26 = vld [vmem:[#allocation8 + $0x70] sm:$0xff]  ;;  %v313_v30 = vld [vmem:[#allocation8 + $0x98] sm:$0xff] }
 0x183   : > { %v561_v36 = vadd.f32 %v560_v34, %v297_v29  ;;  %v309_v29 = vld [vmem:[#allocation8 + $0x78] sm:$0xff] }
 0x184   : > { %567 = vmatprep.subr.mxu0 %v490_v33 }
 0x185   : > { %638 = vmatprep.subr.mxu1 %v561_v36  ;;  %568 = vmatpush1.msra.mxu0 %v488_v35 }
 0x186   : > { %639 = vmatpush1.msra.mxu1 %v559_v38  ;;  %2570 = vmatmul.mubr.msk.f32.vlgmr.msra.gmra.mrb[2].mxu0 %vm563_vm1, %v3256_v37 }
 0x187   : > { %2571 = vmatmul.mubr.msk.f32.vlgmr.msra.gmra.mrb[2].mxu1 %vm563_vm1, %v3256_v37  ;;  %781 = vmatprep.mubr.f32.mxu0 %v2981_v0 }
 0x188   : > { %852 = vmatprep.mubr.f32.mxu1 %v2981_v0 }
 0x259   : > { %v633_v39 = vpop.f32.mrb[2].mxu0 }
 0x25a   : > { %v709_v40 = vsub.f32 %v488_v35, %v633_v39  ;;  %v704_v41 = vpop.f32.mrb[2].mxu1  ;;  %v635_v42 = vpop.f32.mrb[3].mxu0  ;;  %v315_v39 = vld [vmem:[#allocation8 + $0xa8] sm:$0xff] }
 0x25b   : > { %v711_v43 = vsub.f32 %v559_v38, %v704_v41  ;;  %v710_v44 = vsub.f32 %v490_v33, %v635_v42  ;;  %v706_v45 = vpop.f32.mrb[3].mxu1 }
 0x25c   : > { %v712_v46 = vsub.f32 %v561_v36, %v706_v45  ;;  %v713_v48 = vmul.f32 %v709_v40, %v709_v40  ;;  %v314_v45 = vld [vmem:[#allocation8 + $0xa0] sm:$0xff] }
 0x25d   : > { %v714_v47 = vmul.f32 %v710_v44, %v710_v44  ;;  %v715_v50 = vmul.f32 %v711_v43, %v711_v43 }
 0x25e   : > { %v716_v49 = vmul.f32 %v712_v46, %v712_v46 }
 0x25f   : > { %717 = vmatprep.subr.mxu0 %v714_v47 }
 0x260   : > { %788 = vmatprep.subr.mxu1 %v716_v49  ;;  %718 = vmatpush1.msra.mxu0 %v713_v48  ;;  %v316_v48 = vld [vmem:[#allocation8 + $0xb0] sm:$0xff] }
 0x261   : > { %789 = vmatpush1.msra.mxu1 %v715_v50  ;;  %2572 = vmatmul.mubr.msk.f32.vlgmr.msra.gmra.mrb[4].mxu0 %vm563_vm1, %v3256_v37 }
 0x262   : > { %2573 = vmatmul.mubr.msk.f32.vlgmr.msra.gmra.mrb[4].mxu1 %vm563_vm1, %v3256_v37  ;;  %972 = vmatprep.mubr.f32.mxu0 %v2981_v0 }
 0x263   : > { %1043 = vmatprep.mubr.f32.mxu1 %v2981_v0 }
 0x334   : > { %v783_v51 = vpop.f32.mrb[4].mxu0 }
 0x335   : > { %v784_v52 = vadd.f32 1e-06, %v783_v51  ;;  %v854_v53 = vpop.f32.mrb[4].mxu1  ;;  %v785_v54 = vpop.f32.mrb[5].mxu0 }
 0x336   : > { %v855_v55 = vadd.f32 1e-06, %v854_v53  ;;  %v786_v56 = vadd.f32 1e-06, %v785_v54  ;;  %v856_v57 = vpop.f32.mrb[5].mxu1 }
 0x337   : > { %2725 = vrsqrt.f32 %v784_v52  ;;  %v857_v58 = vadd.f32 1e-06, %v856_v57 }
 0x338   : > { %2727 = vrsqrt.f32 %v855_v55 }
 0x339   : > { %2729 = vrsqrt.f32 %v786_v56 }
 0x33a   : > { %2731 = vrsqrt.f32 %v857_v58 }
 0x341   : > { %v2726_v59 = vpop.eup %2725 }
 0x342   : > { %v2728_v61 = vpop.eup %2727  ;;  %v863_v62 = vmul.f32 %v2726_v59, %v709_v40 }
 0x343   : > { %v2730_v1 = vpop.eup %2729  ;;  %v865_v2 = vmul.f32 %v2728_v61, %v711_v43 }
 0x344   : > { %v2732_v5 = vpop.eup %2731  ;;  %v867_v6 = vmul.f32 %v863_v62, %v298_v60  ;;  %v864_v7 = vmul.f32 %v2730_v1, %v710_v44  ;;  %v317_v44 = vld [vmem:[#allocation8 + $0xb8] sm:$0xff] }
 0x345   : > { %v869_v10 = vmul.f32 %v865_v2, %v300_v63  ;;  %v866_v11 = vmul.f32 %v2732_v5, %v712_v46 }
 0x346   : > { %v868_v13 = vmul.f32 %v864_v7, %v299_v3  ;;  %v3270_v15 = vadd.f32 %v867_v6, %v302_v4 }
 0x347   : > { %v870_v16 = vmul.f32 %v866_v11, %v301_v8  ;;  %v3272_v18 = vadd.f32 %v869_v10, %v304_v9 }
 0x348   : > { %v3274_v19 = vadd.f32 %v868_v13, %v303_v12  ;;  %v879_v21 = vrot.slane %v3270_v15, 4  ;;  %v892_v33 = vmul.f32 %v3270_v15, %v306_v20  ;;  %v318_v12 = vld [vmem:[#allocation8 + $0xc0] sm:$0xff] }
 0x349   : > { %v3277_v25 = vadd.f32 %v870_v16, %v305_v14  ;;  %v881_v27 = vrot.slane %v3272_v18, 4  ;;  %v894_v38 = vmul.f32 %v3272_v18, %v308_v26  ;;  %v319_v14 = vld [vmem:[#allocation8 + $0xc8] sm:$0xff]  ;;  %v320_v16 = vld [vmem:[#allocation8 + $0xd0] sm:$0xff] }
 0x34a   : > { %v880_v28 = vrot.slane %v3274_v19, 4  ;;  %v896_v31 = vmul.f32 %v879_v21, %v310_v17  ;;  %v893_v35 = vmul.f32 %v3274_v19, %v307_v23  ;;  %v323_v23 = vld [vmem:[#allocation8 + $0xe8] sm:$0xff] }
 0x34b   : > { %v882_v32 = vrot.slane %v3277_v25, 4  ;;  %v898_v34 = vmul.f32 %v881_v27, %v312_v22  ;;  %v895_v40 = vmul.f32 %v3277_v25, %v309_v29  ;;  %v321_v22 = vld [vmem:[#allocation8 + $0xd8] sm:$0xff]  ;;  %v322_v29 = vld [vmem:[#allocation8 + $0xe0] sm:$0xff] }
 0x34c   : > { %v897_v36 = vmul.f32 %v880_v28, %v311_v24  ;;  %v900_v42 = vadd.f32 %v896_v31, %v892_v33  ;;  %v325_v28 = vld [vmem:[#allocation8 + $0xf8] sm:$0xff] }
 0x34d   : > { %v899_v41 = vmul.f32 %v882_v32, %v313_v30  ;;  %v902_v46 = vadd.f32 %v898_v34, %v894_v38  ;;  %v324_v32 = vld [vmem:[#allocation8 + $0xf0] sm:$0xff] }
 0x34e   : > { %v901_v43 = vadd.f32 %v897_v36, %v893_v35  ;;  %v904_v51 = vadd.f32 %v900_v42, %v314_v45  ;;  %v289_v36 = vld [vmem:[#allocation7 + $0x18] sm:$0xff]  ;;  %v330_v42 = vld [vmem:[#allocation8 + $0x120] sm:$0xff]  ;;  %v331_v45 = vld [vmem:[#allocation8 + $0x128] sm:$0xff] }
 0x34f   : > { %v903_v47 = vadd.f32 %v899_v41, %v895_v40  ;;  %v906_v52 = vadd.f32 %v902_v46, %v316_v48  ;;  %v291_v40 = vld [vmem:[#allocation7 + $0x28] sm:$0xff]  ;;  %v292_v41 = vld [vmem:[#allocation7 + $0x30] sm:$0xff]  ;;  %v333_v48 = vld [vmem:[#allocation8 + $0x138] sm:$0xff] }
 0x350   : > { %v905_v49 = vadd.f32 %v901_v43, %v315_v39  ;;  %v290_v39 = vld [vmem:[#allocation7 + $0x20] sm:$0xff]  ;;  %v332_v43 = vld [vmem:[#allocation8 + $0x130] sm:$0xff] }
 0x351   : > { %v907_v50 = vadd.f32 %v903_v47, %v317_v44 }
 0x352   : > { %908 = vmatprep.subr.mxu0 %v905_v49 }
 0x353   : > { %979 = vmatprep.subr.mxu1 %v907_v50  ;;  %909 = vmatpush1.msra.mxu0 %v904_v51 }
 0x354   : > { %980 = vmatpush1.msra.mxu1 %v906_v52  ;;  %2574 = vmatmul.mubr.msk.f32.vlgmr.msra.gmra.mrb[6].mxu0 %vm563_vm1, %v3256_v37 }
 0x355   : > { %2575 = vmatmul.mubr.msk.f32.vlgmr.msra.gmra.mrb[6].mxu1 %vm563_vm1, %v3256_v37  ;;  %1122 = vmatprep.mubr.f32.mxu0 %v2981_v0 }
 0x356   : > { %1193 = vmatprep.mubr.f32.mxu1 %v2981_v0 }
 0x427   : > { %v974_v53 = vpop.f32.mrb[6].mxu0 }
 0x428   : > { %v1050_v54 = vsub.f32 %v904_v51, %v974_v53  ;;  %v1045_v55 = vpop.f32.mrb[6].mxu1  ;;  %v976_v56 = vpop.f32.mrb[7].mxu0 }
 0x429   : > { %v1052_v57 = vsub.f32 %v906_v52, %v1045_v55  ;;  %v1051_v58 = vsub.f32 %v905_v49, %v976_v56  ;;  %v1047_v59 = vpop.f32.mrb[7].mxu1  ;;  %v334_v55 = vld [vmem:[#allocation8 + $0x140] sm:$0xff] }
 0x42a   : > { %v1053_v60 = vsub.f32 %v907_v50, %v1047_v59  ;;  %v1054_v62 = vmul.f32 %v1050_v54, %v1050_v54 }
 0x42b   : > { %v1055_v61 = vmul.f32 %v1051_v58, %v1051_v58  ;;  %v1056_v1 = vmul.f32 %v1052_v57, %v1052_v57 }
 0x42c   : > { %v1057_v63 = vmul.f32 %v1053_v60, %v1053_v60 }
 0x42d   : > { %1058 = vmatprep.subr.mxu0 %v1055_v61 }
 0x42e   : > { %1129 = vmatprep.subr.mxu1 %v1057_v63  ;;  %1059 = vmatpush1.msra.mxu0 %v1054_v62  ;;  %v338_v62 = vld [vmem:[#allocation8 + $0x160] sm:$0xff] }
 0x42f   : > { %1130 = vmatpush1.msra.mxu1 %v1056_v1  ;;  %2576 = vmatmul.mubr.msk.f32.vlgmr.msra.gmra.mrb[8].mxu0 %vm563_vm1, %v3256_v37  ;;  %v340_v1 = vld [vmem:[#allocation8 + $0x170] sm:$0xff] }
 0x430   : > { %2577 = vmatmul.mubr.msk.f32.vlgmr.msra.gmra.mrb[8].mxu1 %vm563_vm1, %v3256_v37  ;;  %1292 = vmatprep.mubr.f32.mxu0 %v2981_v0 }
 0x431   : > { %1381 = vmatprep.mubr.f32.mxu1 %v2981_v0 }
 0x502   : > { %v1124_v2 = vpop.f32.mrb[8].mxu0 }
 0x503   : > { %v1125_v3 = vadd.f32 1e-06, %v1124_v2  ;;  %v1195_v4 = vpop.f32.mrb[8].mxu1  ;;  %v1126_v5 = vpop.f32.mrb[9].mxu0  ;;  %v339_v2 = vld [vmem:[#allocation8 + $0x168] sm:$0xff] }
 0x504   : > { %v1196_v6 = vadd.f32 1e-06, %v1195_v4  ;;  %v1127_v7 = vadd.f32 1e-06, %v1126_v5  ;;  %v1197_v8 = vpop.f32.mrb[9].mxu1  ;;  %v335_v5 = vld [vmem:[#allocation8 + $0x148] sm:$0xff] }
 0x505   : > { %2733 = vrsqrt.f32 %v1125_v3  ;;  %v1198_v9 = vadd.f32 1e-06, %v1197_v8 }
 0x506   : > { %2735 = vrsqrt.f32 %v1196_v6 }
 0x507   : > { %2737 = vrsqrt.f32 %v1127_v7  ;;  %v341_v7 = vld [vmem:[#allocation8 + $0x178] sm:$0xff] }
 0x508   : > { %2739 = vrsqrt.f32 %v1198_v9 }
 0x50f   : > { %v2734_v10 = vpop.eup %2733 }
 0x510   : > { %v2736_v11 = vpop.eup %2735  ;;  %v1204_v37 = vmul.f32 %v2734_v10, %v1050_v54 }
 0x511   : > { %v2738_v13 = vpop.eup %2737  ;;  %v1206_v17 = vmul.f32 %v2736_v11, %v1052_v57 }
 0x512   : > { %v2740_v20 = vpop.eup %2739  ;;  %v1205_v21 = vmul.f32 %v2738_v13, %v1051_v58  ;;  %v1208_v26 = vmul.f32 %v1204_v37, %v318_v12 }
 0x513   : > { %v1207_v24 = vmul.f32 %v2740_v20, %v1053_v60  ;;  %v1210_v30 = vmul.f32 %v1206_v17, %v320_v16  ;;  %v336_v60 = vld [vmem:[#allocation8 + $0x150] sm:$0xff]  ;;  %v342_v17 = vld [vmem:[#allocation8 + $0x180] sm:$0xff] }
 0x514   : > { %v1209_v27 = vmul.f32 %v1205_v21, %v319_v14  ;;  %v1212_v35 = vadd.f32 %v1208_v26, %v322_v29  ;;  %v343_v26 = vld [vmem:[#allocation8 + $0x188] sm:$0xff] }
 0x515   : > { %v1211_v31 = vmul.f32 %v1207_v24, %v321_v22  ;;  %v1214_v38 = vadd.f32 %v1210_v30, %v324_v32  ;;  %v344_v24 = vld [vmem:[#allocation8 + $0x190] sm:$0xff] }
 0x516   : > { %v1213_v33 = vadd.f32 %v1209_v27, %v323_v23 }
 0x517   : > { %v1215_v34 = vadd.f32 %v1211_v31, %v325_v28 }
 0x518   : > { %1228 = vmatprep.subr.mxu0 %v1213_v33 }
 0x519   : > { %1317 = vmatprep.subr.mxu1 %v1215_v34  ;;  %1229 = vmatpush1.msra.mxu0 %v1212_v35 }
 0x51a   : > { %1318 = vmatpush1.msra.mxu1 %v1214_v38  ;;  %2578 = vmatmul.mubr.msk.f32.vlgmr.msra.gmra.mrb[10].mxu0 %vm563_vm1, %v289_v36 }
 0x51b   : > { %2582 = vmatmul.mubr.msk.f32.vlgmr.msra.gmra.mrb[10].mxu1 %vm563_vm1, %v289_v36  ;;  %1298 = vmatprep.mubr.f32.mxu0 %v2981_v0 }
 0x51c   : > { %1387 = vmatprep.mubr.f32.mxu1 %v2981_v0 }
 0x51e   : > { %2579 = vmatmul.mubr.msk.f32.gmra.mrb[12].mxu0 %vm563_vm1, %v290_v39 }
 0x51f   : > { %2583 = vmatmul.mubr.msk.f32.gmra.mrb[12].mxu1 %vm563_vm1, %v290_v39  ;;  %1304 = vmatprep.mubr.f32.mxu0 %v2981_v0 }
 0x520   : > { %1393 = vmatprep.mubr.f32.mxu1 %v2981_v0 }
 0x522   : > { %2580 = vmatmul.mubr.msk.f32.gmra.mrb[14].mxu0 %vm563_vm1, %v291_v40 }
 0x523   : > { %2584 = vmatmul.mubr.msk.f32.gmra.mrb[14].mxu1 %vm563_vm1, %v291_v40  ;;  %1310 = vmatprep.mubr.f32.mxu0 %v2981_v0 }
 0x524   : > { %1399 = vmatprep.mubr.f32.mxu1 %v2981_v0 }
 0x526   : > { %2581 = vmatmul.mubr.msk.f32.gmra.mrb[16].mxu0 %vm563_vm1, %v292_v41 }
 0x527   : > { %2585 = vmatmul.mubr.msk.f32.gmra.mrb[16].mxu1 %vm563_vm1, %v292_v41  ;;  %1682 = vmatprep.mubr.f32.mxu0 %v2981_v0 }
 0x528   : > { %1753 = vmatprep.mubr.f32.mxu1 %v2981_v0 }
 0x5ed   : > { %v1294_v44 = vpop.f32.mrb[10].mxu0 }
 0x5ee   : > { %v1383_v46 = vpop.f32.mrb[10].mxu1  ;;  %v1296_v47 = vpop.f32.mrb[11].mxu0  ;;  %v1295_v49 = vadd.f32 %v1294_v44, %v330_v42 }
 0x5ef   : > { %v1384_v50 = vadd.f32 %v1383_v46, %v332_v43  ;;  %v1385_v51 = vpop.f32.mrb[11].mxu1  ;;  %v1297_v52 = vadd.f32 %v1296_v47, %v331_v45  ;;  %v337_v45 = vld [vmem:[#allocation8 + $0x158] sm:$0xff] }
 0x5f0   : > { %v1386_v53 = vadd.f32 %v1385_v51, %v333_v48  ;;  %v3314_v58 = vmax.f32 %v1295_v49, 0.0 }
 0x5f1   : > { %v1300_v54 = vpop.f32.mrb[12].mxu0  ;;  %v3316_v59 = vmax.f32 %v1384_v50, 0.0  ;;  %v3318_v63 = vmax.f32 %v1297_v52, 0.0 }
 0x5f2   : > { %v1389_v56 = vpop.f32.mrb[12].mxu1  ;;  %v1302_v57 = vpop.f32.mrb[13].mxu0  ;;  %v3320_v3 = vmax.f32 %v1386_v53, 0.0  ;;  %v1301_v4 = vadd.f32 %v1300_v54, %v334_v55  ;;  %v1422_v12 = vmul.f32 %v3314_v58, %v3314_v58 }
 0x5f3   : > { %v1391_v61 = vpop.f32.mrb[13].mxu1  ;;  %v1390_v8 = vadd.f32 %v1389_v56, %v336_v60  ;;  %v1424_v37 = vmul.f32 %v3316_v59, %v3316_v59  ;;  %v1423_v20 = vmul.f32 %v3318_v63, %v3318_v63  ;;  %v1303_v21 = vadd.f32 %v1302_v57, %v335_v5  ;;  %v345_v56 = vld [vmem:[#allocation8 + $0x198] sm:$0xff] }
 0x5f4   : > { %v1425_v27 = vmul.f32 %v3320_v3, %v3320_v3  ;;  %v3332_v28 = vmax.f32 %v1301_v4, 0.0  ;;  %v1392_v60 = vadd.f32 %v1391_v61, %v337_v45 }
 0x5f5   : > { %v1306_v6 = vpop.f32.mrb[14].mxu0  ;;  %v3338_v32 = vmax.f32 %v1390_v8, 0.0  ;;  %v3348_v44 = vmax.f32 %v1303_v21, 0.0 }
 0x5f6   : > { %v1307_v9 = vadd.f32 %v1306_v6, %v338_v62  ;;  %v1395_v10 = vpop.f32.mrb[14].mxu1  ;;  %v1308_v11 = vpop.f32.mrb[15].mxu0  ;;  %v1426_v53 = vmul.f32 %v3332_v28, %v3332_v28 }
 0x5f7   : > { %v1396_v13 = vadd.f32 %v1395_v10, %v340_v1  ;;  %v1309_v14 = vadd.f32 %v1308_v11, %v339_v2  ;;  %v1397_v16 = vpop.f32.mrb[15].mxu1  ;;  %v1428_v57 = vmul.f32 %v3338_v32, %v3338_v32  ;;  %v1427_v6 = vmul.f32 %v3348_v44, %v3348_v44 }
 0x5f8   : > { %v3328_v22 = vmax.f32 %v1307_v9, 0.0  ;;  %v1398_v23 = vadd.f32 %v1397_v16, %v341_v7  ;;  %v3381_v7 = vmax.f32 %v1392_v60, 0.0 }
 0x5f9   : > { %v3334_v29 = vmax.f32 %v1396_v13, 0.0  ;;  %v3336_v30 = vmax.f32 %v1309_v14, 0.0  ;;  %v1312_v31 = vpop.f32.mrb[16].mxu0 }
 0x5fa   : > { %v1430_v33 = vmul.f32 %v3328_v22, %v3328_v22  ;;  %v3342_v34 = vmax.f32 %v1398_v23, 0.0  ;;  %v1313_v35 = vadd.f32 %v1312_v31, %v342_v17  ;;  %v1401_v36 = vpop.f32.mrb[16].mxu1  ;;  %v1314_v38 = vpop.f32.mrb[17].mxu0  ;;  %v1429_v9 = vmul.f32 %v3381_v7, %v3381_v7 }
 0x5fb   : > { %v1432_v39 = vmul.f32 %v3334_v29, %v3334_v29  ;;  %v1431_v40 = vmul.f32 %v3336_v30, %v3336_v30  ;;  %v1402_v41 = vadd.f32 %v1401_v36, %v344_v24  ;;  %v1315_v42 = vadd.f32 %v1314_v38, %v343_v26  ;;  %v1403_v43 = vpop.f32.mrb[17].mxu1 }
 0x5fc   : > { %v3350_v46 = vadd.f32 %v1430_v33, %v1422_v12  ;;  %v1433_v47 = vmul.f32 %v3342_v34, %v3342_v34  ;;  %v3354_v48 = vmax.f32 %v1313_v35, 0.0  ;;  %v1404_v5 = vadd.f32 %v1403_v43, %v345_v56 }
 0x5fd   : > { %v3356_v49 = vadd.f32 %v1432_v39, %v1424_v37  ;;  %v3358_v50 = vadd.f32 %v1431_v40, %v1423_v20  ;;  %v3360_v51 = vmax.f32 %v1402_v41, 0.0  ;;  %v3362_v52 = vmax.f32 %v1315_v42, 0.0 }
 0x5fe   : > { %2741 = vrsqrt.f32 %v3350_v46  ;;  %v3367_v54 = vadd.f32 %v1433_v47, %v1425_v27  ;;  %v1434_v55 = vmul.f32 %v3354_v48, %v3354_v48  ;;  %v3384_v8 = vmax.f32 %v1404_v5, 0.0 }
 0x5ff   : > { %2743 = vrsqrt.f32 %v3356_v49  ;;  %v1436_v62 = vmul.f32 %v3360_v51, %v3360_v51  ;;  %v1435_v4 = vmul.f32 %v3362_v52, %v3362_v52  ;;  %vm1448_vm2 = vcmp.eq.f32.partialorder %v3350_v46, inf }
 0x600   : > { %2745 = vrsqrt.f32 %v3358_v50  ;;  %v1442_v1 = vadd.f32 %v1434_v55, %v1426_v53  ;;  %v1437_v10 = vmul.f32 %v3384_v8, %v3384_v8  ;;  %vm1450_vm3 = vcmp.eq.f32.partialorder %v3350_v46, 0.0 }
 0x601   : > { %v1444_v2 = vadd.f32 %v1436_v62, %v1428_v57  ;;  %v1443_v61 = vadd.f32 %v1435_v4, %v1427_v6  ;;  %v1451_v17 = vand.u32 2147483648, %v3350_v46  ;;  %vm1462_vm4 = vcmp.eq.f32.partialorder %v3356_v49, inf }
 0x602   : > { %2747 = vrsqrt.f32 %v1442_v1  ;;  %v3391_v13 = vadd.f32 %v1437_v10, %v1429_v9  ;;  %vm1476_vm5 = vcmp.eq.f32.partialorder %v1442_v1, inf  ;;  %vm1478_vm6 = vcmp.eq.f32.partialorder %v1442_v1, 0.0 }
 0x603   : > { %2749 = vrsqrt.f32 %v1444_v2  ;;  %vm1464_vm7 = vcmp.eq.f32.partialorder %v3356_v49, 0.0  ;;  %v1465_v21 = vand.u32 2147483648, %v3356_v49  ;;  %v1479_v33 = vand.u32 2147483648, %v1442_v1 }
 0x604   : > { %2751 = vrsqrt.f32 %v3367_v54  ;;  %vm1490_vm8 = vcmp.eq.f32.partialorder %v1444_v2, inf  ;;  %vm1492_vm9 = vcmp.eq.f32.partialorder %v1444_v2, 0.0  ;;  %v1493_v39 = vand.u32 2147483648, %v1444_v2 }
 0x605   : > { %2753 = vrsqrt.f32 %v1443_v61  ;;  %vm1455_vm10 = vcmp.eq.f32.partialorder %v3358_v50, inf  ;;  %v1458_v40 = vand.u32 2147483648, %v3358_v50  ;;  %vm1483_vm11 = vcmp.eq.f32.partialorder %v1443_v61, inf }
 0x606   : > { %2755 = vrsqrt.f32 %v3391_v13  ;;  %v1486_v60 = vand.u32 2147483648, %v1443_v61  ;;  %vm1457_vm12 = vcmp.eq.f32.partialorder %v3358_v50, 0.0  ;;  %vm1485_vm13 = vcmp.eq.f32.partialorder %v1443_v61, 0.0 }
 0x607   : > { %vm1469_vm14 = vcmp.eq.f32.partialorder %v3367_v54, inf  ;;  %vm1497_vm15 = vcmp.eq.f32.partialorder %v3391_v13, inf  ;;  %vm1471_vm1 = vcmp.eq.f32.partialorder %v3367_v54, 0.0 }
 0x608   : > { %v2742_v11 = vpop.eup %2741 }
 0x609   : > { %v2744_v12 = vpop.eup %2743  ;;  %v1447_v37 = vmul.f32 %v2742_v11, %v3350_v46 }
 0x60a   : > { %v2746_v14 = vpop.eup %2745  ;;  %v1461_v16 = vmul.f32 %v2744_v12, %v3356_v49 }
 0x60b   : > { %v1449_v24 = vsel %vm1448_vm2, %v3350_v46, %v1447_v37  ;;  %v1454_v31 = vmul.f32 %v2746_v14, %v3358_v50  ;;  %v1472_v37 = vand.u32 2147483648, %v3367_v54  ;;  %vm1499_vm2 = vcmp.eq.f32.partialorder %v3391_v13, 0.0 }
 0x60c   : > { %v2748_v20 = vpop.eup %2747  ;;  %v1463_v27 = vsel %vm1462_vm4, %v3356_v49, %v1461_v16  ;;  %v3408_v42 = vsel %vm1450_vm3, %v1451_v17, %v1449_v24  ;;  %v1500_v16 = vand.u32 2147483648, %v3391_v13  ;;  %vm1788_vm3 = vcmask 31744  }
 0x60d   : > { %v2750_v23 = vpop.eup %2749  ;;  %v1475_v26 = vmul.f32 %v2748_v20, %v1442_v1  ;;  %v3415_v45 = vsel %vm1464_vm7, %v1465_v21, %v1463_v27  ;;  %v1456_v56 = vsel %vm1455_vm10, %v3358_v50, %v1454_v31  ;;  %vm2409_vm4 = vcmask 1040384  }
 0x60e   : > { %v1489_v35 = vmul.f32 %v2750_v23, %v1444_v2  ;;  %v2752_v36 = vpop.eup %2751  ;;  %v3426_v4 = vsel %vm1457_vm12, %v1458_v40, %v1456_v56 }
 0x60f   : > { %v1477_v38 = vsel %vm1476_vm5, %v1442_v1, %v1475_v26  ;;  %v2754_v41 = vpop.eup %2753  ;;  %v1468_v62 = vmul.f32 %v2752_v36, %v3367_v54 }
 0x610   : > { %v3411_v43 = vsel %vm1478_vm6, %v1479_v33, %v1477_v38  ;;  %v1491_v47 = vsel %vm1490_vm8, %v1444_v2, %v1489_v35  ;;  %v1482_v57 = vmul.f32 %v2754_v41, %v1443_v61  ;;  %v2756_v6 = vpop.eup %2755 }
 0x611   : > { %v1502_v53 = vadd.f32 %v3411_v43, %v3408_v42  ;;  %v3419_v55 = vsel %vm1492_vm9, %v1493_v39, %v1491_v47  ;;  %v1470_v12 = vsel %vm1469_vm14, %v3367_v54, %v1468_v62  ;;  %v1496_v50 = vmul.f32 %v2756_v6, %v3391_v13 }
 0x612   : > { %v1516_v46 = vadd.f32 %v3419_v55, %v3415_v45  ;;  %v1484_v49 = vsel %vm1483_vm11, %v1443_v61, %v1482_v57  ;;  %v3441_v24 = vsel %vm1471_vm1, %v1472_v37, %v1470_v12 }
 0x613   : > { %v1503_v1 = vrot.slane %v1502_v53, 4  ;;  %v3428_v5 = vsel %vm1485_vm13, %v1486_v60, %v1484_v49  ;;  %v1498_v20 = vsel %vm1497_vm15, %v3391_v13, %v1496_v50 }
 0x614   : > { %v1517_v2 = vrot.slane %v1516_v46, 4  ;;  %v1509_v10 = vadd.f32 %v3428_v5, %v3426_v4  ;;  %v3443_v26 = vsel %vm1499_vm2, %v1500_v16, %v1498_v20  ;;  %v352_v16 = vld [vmem:[#allocation8 + $0x1d0] sm:$0xff] }
 0x615   : > { %v1504_v9 = vadd.f32 %v1503_v1, %v1502_v53  ;;  %v1523_v31 = vadd.f32 %v3443_v26, %v3441_v24 }
 0x616   : > { %v1518_v11 = vadd.f32 %v1517_v2, %v1516_v46  ;;  %v1510_v14 = vrot.slane %v1509_v10, 4 }
 0x617   : > { %v1505_v61 = vrot.slane %v1504_v9, 2  ;;  %v1524_v38 = vrot.slane %v1523_v31, 4 }
 0x618   : > { %v1519_v17 = vrot.slane %v1518_v11, 2  ;;  %v1511_v23 = vadd.f32 %v1510_v14, %v1509_v10  ;;  %v358_v14 = vld [vmem:[#allocation8 + $0x200] sm:$0xff] }
 0x619   : > { %v1506_v21 = vadd.f32 %v1505_v61, %v1504_v9  ;;  %v1525_v41 = vadd.f32 %v1524_v38, %v1523_v31  ;;  %v350_v61 = vld [vmem:[#allocation8 + $0x1c0] sm:$0xff]  ;;  %v376_v38 = vld [vmem:[#allocation8 + $0x290] sm:$0xff] }
 0x61a   : > { %v1520_v27 = vadd.f32 %v1519_v17, %v1518_v11  ;;  %v1512_v35 = vrot.slane %v1511_v23, 2 }
 0x61b   : > { %v1507_v33 = vrot.slane %v1506_v21, 1  ;;  %v1526_v56 = vrot.slane %v1525_v41, 2 }
 0x61c   : > { %v1521_v36 = vrot.slane %v1520_v27, 1  ;;  %v1513_v54 = vadd.f32 %v1512_v35, %v1511_v23  ;;  %v348_v35 = vld [vmem:[#allocation8 + $0x1b0] sm:$0xff] }
 0x61d   : > { %v1508_v39 = vadd.f32 %v1507_v33, %v1506_v21  ;;  %v1527_v62 = vadd.f32 %v1526_v56, %v1525_v41  ;;  %v360_v33 = vld [vmem:[#allocation8 + $0x210] sm:$0xff]  ;;  %v366_v56 = vld [vmem:[#allocation8 + $0x240] sm:$0xff] }
 0x61e   : > { %v1522_v40 = vadd.f32 %v1521_v36, %v1520_v27  ;;  %v1514_v13 = vrot.slane %v1513_v54, 1  ;;  %v374_v36 = vld [vmem:[#allocation8 + $0x280] sm:$0xff] }
 0x61f   : > { %v1531_v47 = vmul.f32 0.0625, %v1508_v39  ;;  %v1528_v49 = vrot.slane %v1527_v62, 1 }
 0x620   : > { %v1533_v53 = vmul.f32 0.0625, %v1522_v40  ;;  %v1515_v46 = vadd.f32 %v1514_v13, %v1513_v54 }
 0x621   : > { %v1535_v57 = vadd.f32 1e-06, %v1531_v47  ;;  %v1529_v6 = vadd.f32 %v1528_v49, %v1527_v62  ;;  %v359_v62 = vld [vmem:[#allocation8 + $0x208] sm:$0xff] }
 0x622   : > { %v1537_v60 = vadd.f32 1e-06, %v1533_v53  ;;  %v1532_v1 = vmul.f32 0.0625, %v1515_v46  ;;  %v362_v53 = vld [vmem:[#allocation8 + $0x220] sm:$0xff]  ;;  %v351_v49 = vld [vmem:[#allocation8 + $0x1c8] sm:$0xff] }
 0x623   : > { %2757 = vrcp.f32 %v1535_v57  ;;  %v1534_v9 = vmul.f32 0.0625, %v1529_v6  ;;  %v364_v57 = vld [vmem:[#allocation8 + $0x230] sm:$0xff] }
 0x624   : > { %2759 = vrcp.f32 %v1537_v60  ;;  %v1536_v2 = vadd.f32 1e-06, %v1532_v1  ;;  %v347_v1 = vld [vmem:[#allocation8 + $0x1a8] sm:$0xff] }
 0x625   : > { %v1538_v10 = vadd.f32 1e-06, %v1534_v9 }
 0x626   : > { %2761 = vrcp.f32 %v1536_v2 }
 0x627   : > { %2763 = vrcp.f32 %v1538_v10 }
 0x62d   : > { %v2758_v11 = vpop.eup %2757 }
 0x62e   : > { %v2760_v12 = vpop.eup %2759  ;;  %v1543_v37 = vmul.f32 %v2758_v11, %v3408_v42  ;;  %v1547_v50 = vmul.f32 %v2758_v11, %v3411_v43  ;;  %v346_v42 = vld [vmem:[#allocation8 + $0x1a0] sm:$0xff] }
 0x62f   : > { %v1545_v17 = vmul.f32 %v2760_v12, %v3415_v45  ;;  %v1549_v20 = vmul.f32 %v2760_v12, %v3419_v55 }
 0x630   : > { %v1551_v21 = vmul.f32 %v1543_v37, %v3314_v58  ;;  %v1555_v23 = vmul.f32 %v1547_v50, %v3332_v28  ;;  %v3454_v27 = vmul.f32 %v1543_v37, %v3328_v22  ;;  %v1563_v31 = vmul.f32 %v1547_v50, %v3354_v48  ;;  %v2762_v43 = vpop.eup %2761  ;;  %v375_v37 = vld [vmem:[#allocation8 + $0x288] sm:$0xff] }
 0x631   : > { %v1553_v39 = vmul.f32 %v1545_v17, %v3316_v59  ;;  %v1557_v45 = vmul.f32 %v1549_v20, %v3338_v32  ;;  %v3460_v55 = vmul.f32 %v1545_v17, %v3334_v29  ;;  %v1565_v54 = vmul.f32 %v1549_v20, %v3360_v51  ;;  %v367_v50 = vld [vmem:[#allocation8 + $0x248] sm:$0xff]  ;;  %v2764_v17 = vpop.eup %2763 }
 0x632   : > { %v1571_v40 = vmul.f32 %v1555_v23, %v350_v61  ;;  %v1579_v41 = vmul.f32 %v1563_v31, %v358_v14  ;;  %v1544_v47 = vmul.f32 %v2762_v43, %v3426_v4  ;;  %v1548_v13 = vmul.f32 %v2762_v43, %v3428_v5  ;;  %v363_v5 = vld [vmem:[#allocation8 + $0x228] sm:$0xff] }
 0x633   : > { %v1573_v46 = vmul.f32 %v1557_v45, %v352_v16  ;;  %v1581_v60 = vmul.f32 %v1565_v54, %v360_v33  ;;  %v1567_v2 = vmul.f32 %v1551_v21, %v346_v42  ;;  %v1569_v6 = vmul.f32 %v1553_v39, %v348_v35  ;;  %v368_v33 = vld [vmem:[#allocation8 + $0x250] sm:$0xff]  ;;  %v361_v39 = vld [vmem:[#allocation8 + $0x218] sm:$0xff] }
 0x634   : > { %v1595_v9 = vadd.f32 %v1579_v41, %v374_v36  ;;  %v1556_v10 = vmul.f32 %v1548_v13, %v3348_v44  ;;  %v1564_v11 = vmul.f32 %v1548_v13, %v3362_v52  ;;  %v1552_v12 = vmul.f32 %v1544_v47, %v3318_v63  ;;  %v377_v13 = vld [vmem:[#allocation8 + $0x298] sm:$0xff] }
 0x635   : > { %v1597_v4 = vadd.f32 %v1581_v60, %v376_v38  ;;  %v1583_v61 = vadd.f32 %v1567_v2, %v362_v53  ;;  %v1587_v14 = vadd.f32 %v1571_v40, %v366_v56  ;;  %v1585_v16 = vadd.f32 %v1569_v6, %v364_v57  ;;  %v349_v40 = vld [vmem:[#allocation8 + $0x1b8] sm:$0xff] }
 0x636   : > { %v3469_v20 = vadd.f32 %v1595_v9, %v3354_v48  ;;  %v1580_v21 = vmul.f32 %v1564_v11, %v359_v62  ;;  %v1568_v23 = vmul.f32 %v1552_v12, %v347_v1  ;;  %v1572_v31 = vmul.f32 %v1556_v10, %v351_v49  ;;  %v353_v48 = vld [vmem:[#allocation8 + $0x1d8] sm:$0xff]  ;;  %v354_v49 = vld [vmem:[#allocation8 + $0x1e0] sm:$0xff]  ;;  %v355_v10 = vld [vmem:[#allocation8 + $0x1e8] sm:$0xff] }
 0x637   : > { %v3472_v42 = vadd.f32 %v1597_v4, %v3360_v51  ;;  %v1546_v35 = vmul.f32 %v2764_v17, %v3441_v24  ;;  %v1550_v43 = vmul.f32 %v2764_v17, %v3443_v26  ;;  %v1599_v36 = vadd.f32 %v1583_v61, %v3314_v58  ;;  %v365_v60 = vld [vmem:[#allocation8 + $0x238] sm:$0xff]  ;;  %v356_v12 = vld [vmem:[#allocation8 + $0x1f0] sm:$0xff]  ;;  %v371_v61 = vld [vmem:[#allocation8 + $0x268] sm:$0xff] }
 0x638   : > { %v1596_v38 = vadd.f32 %v1580_v21, %v375_v37  ;;  %v1584_v45 = vadd.f32 %v1568_v23, %v363_v5  ;;  %v1588_v54 = vadd.f32 %v1572_v31, %v367_v50  ;;  %v1603_v41 = vadd.f32 %v1587_v14, %v3332_v28  ;;  %v369_v62 = vld [vmem:[#allocation8 + $0x258] sm:$0xff]  ;;  %v372_v21 = vld [vmem:[#allocation8 + $0x270] sm:$0xff] }
 0x639   : > { %v1558_v53 = vmul.f32 %v1550_v43, %v3381_v7  ;;  %v1566_v51 = vmul.f32 %v1550_v43, %v3384_v8  ;;  %v1554_v56 = vmul.f32 %v1546_v35, %v3320_v3  ;;  %v1589_v24 = vadd.f32 %v1573_v46, %v368_v33  ;;  %v357_v11 = vld [vmem:[#allocation8 + $0x1f8] sm:$0xff] }
 0x63a   : > { %v1612_v26 = vadd.f32 %v1596_v38, %v3362_v52  ;;  %v1600_v58 = vadd.f32 %v1584_v45, %v3318_v63  ;;  %v1604_v57 = vadd.f32 %v1588_v54, %v3348_v44  ;;  %v2632_v1 = vpack.c.bf16 %v1603_v41, %v1599_v36  ;;  %v370_v44 = vld [vmem:[#allocation8 + $0x260] sm:$0xff]  ;;  %v373_v14 = vld [vmem:[#allocation8 + $0x278] sm:$0xff] }
 0x63b   : > { %v1582_v2 = vmul.f32 %v1566_v51, %v361_v39  ;;  %v1570_v28 = vmul.f32 %v1554_v56, %v349_v40  ;;  %v1574_v6 = vmul.f32 %v1558_v53, %v353_v48  ;;  %v1601_v9 = vadd.f32 %v1585_v16, %v3316_v59  ;;  %v287_v48 = vld [vmem:[#allocation7 + $0x8] sm:$0xff]  ;;  %v329_v51 = vld [vmem:[#allocation8 + $0x118] sm:$0xff] }
 0x63c   : > { %v2630_v4 = vpack.c.bf16 %v1604_v57, %v1600_v58  ;;  %v1605_v46 = vadd.f32 %v1589_v24, %v3338_v32  ;;  %v1560_v52 = vmul.f32 %v1544_v47, %v3336_v30  ;;  %v1562_v63 = vmul.f32 %v1546_v35, %v3342_v34 }
 0x63d   : > { %v1598_v37 = vadd.f32 %v1582_v2, %v377_v13  ;;  %v1586_v5 = vadd.f32 %v1570_v28, %v365_v60  ;;  %v1590_v50 = vadd.f32 %v1574_v6, %v369_v62  ;;  %v1575_v17 = vmul.f32 %v3454_v27, %v354_v49 }
 0x63e   : > { %2631 = vmatprep.subr.bf16.mxu0 %v2630_v4  ;;  %v2640_v59 = vpack.c.bf16 %v1605_v46, %v1601_v9  ;;  %v1576_v16 = vmul.f32 %v1560_v52, %v355_v10  ;;  %v1578_v23 = vmul.f32 %v1562_v63, %v357_v11  ;;  %v1577_v31 = vmul.f32 %v3460_v55, %v356_v12 }
 0x63f   : > { %v1614_v32 = vadd.f32 %v1598_v37, %v3384_v8  ;;  %v1602_v47 = vadd.f32 %v1586_v5, %v3320_v3  ;;  %v1606_v33 = vadd.f32 %v1590_v50, %v3381_v7  ;;  %2633 = vmatpush1.bf16.msra.mxu0 %v2632_v1  ;;  %v1591_v35 = vadd.f32 %v1575_v17, %v370_v44 }
 0x640   : > { %v1592_v43 = vadd.f32 %v1576_v16, %v371_v61  ;;  %v1594_v36 = vadd.f32 %v1578_v23, %v373_v14  ;;  %v1593_v38 = vadd.f32 %v1577_v31, %v372_v21 }
 0x641   : > { %v2638_v39 = vpack.c.bf16 %v1606_v33, %v1602_v47  ;;  %v1607_v27 = vadd.f32 %v1591_v35, %v3328_v22  ;;  %v326_v22 = vld [vmem:[#allocation8 + $0x100] sm:$0xff] }
 0x642   : > { %v1608_v45 = vadd.f32 %v1592_v43, %v3336_v30  ;;  %v1610_v54 = vadd.f32 %v1594_v36, %v3342_v34  ;;  %v1609_v55 = vadd.f32 %v1593_v38, %v3334_v29  ;;  %v328_v34 = vld [vmem:[#allocation8 + $0x110] sm:$0xff]  ;;  %v383_v43 = vld [vmem:[#allocation8 + $0x2a8] sm:$0xf0] }
 0x643   : > { %2639 = vmatprep.subr.bf16.mxu1 %v2638_v39  ;;  %v2636_v8 = vpack.c.bf16 %v3469_v20, %v1607_v27  ;;  %v385_v39 = vld [vmem:[#allocation8 + $0x2b8] sm:$0xf0]  ;;  %v378_v27 = vld [vmem:[#allocation8 + $0x2a0] sm:$0xf] }
 0x644   : > { %2641 = vmatpush1.bf16.msra.mxu1 %v2640_v59  ;;  %v2634_v3 = vpack.c.bf16 %v1612_v26, %v1608_v45  ;;  %v2642_v7 = vpack.c.bf16 %v1614_v32, %v1610_v54  ;;  %v2644_v40 = vpack.c.bf16 %v3472_v42, %v1609_v55  ;;  %v327_v42 = vld [vmem:[#allocation8 + $0x108] sm:$0xff]  ;;  %v382_v45 = vld [vmem:[#allocation8 + $0x2a0] sm:$0xf0] }
 0x645   : > { %v379_v55 = vld [vmem:[#allocation8 + $0x2a8] sm:$0xf] }
 0x646   : > { %2635 = vmatprep.subr.bf16.mxu0 %v2634_v3  ;;  %2643 = vmatprep.subr.bf16.mxu1 %v2642_v7  ;;  %v384_v3 = vld [vmem:[#allocation8 + $0x2b0] sm:$0xf0] }
 0x647   : > { %2637 = vmatpush1.bf16.msra.mxu0 %v2636_v8  ;;  %v380_v8 = vld [vmem:[#allocation8 + $0x2b0] sm:$0xf] }
 0x648   : > { %2645 = vmatpush1.bf16.msra.mxu1 %v2644_v40 }
 0x64a   : > { %2586 = vmatmul.mubr.msk.f32.vlgmr.msra.gmra.mrb[18].mxu0 %vm417_vm0, %v287_v48 }
 0x64b   : > { %2587 = vmatmul.mubr.msk.f32.vlgmr.msra.gmra.mrb[18].mxu1 %vm417_vm0, %v287_v48  ;;  %1867 = vmatprep.mubr.f32.mxu0 %v2981_v0  ;;  %vm887_vm0 = vcmask 1043456   ;;  %v2124_v48 = vrot.slane %v383_v43, 4 }
 0x64c   : > { %1938 = vmatprep.mubr.f32.mxu1 %v2981_v0 }
 0x71d   : > { %v1684_v29 = vpop.f32.mrb[18].mxu0 }
 0x71e   : > { %v1760_v30 = vadd.f32 %v1684_v29, %v3270_v15  ;;  %v1755_v20 = vpop.f32.mrb[18].mxu1  ;;  %v1686_v41 = vpop.f32.mrb[19].mxu0 }
 0x71f   : > { %v1762_v13 = vadd.f32 %v1755_v20, %v3272_v18  ;;  %v1761_v53 = vadd.f32 %v1686_v41, %v3274_v19  ;;  %v1757_v56 = vpop.f32.mrb[19].mxu1  ;;  %v2123_v20 = vrot.slane %v382_v45, 4 }
 0x720   : > { %v1764_v24 = vadd.f32 %v1760_v30, %v326_v22  ;;  %v1763_v26 = vadd.f32 %v1757_v56, %v3277_v25  ;;  %v2775_v25 = vld [vmem:[#allocation7 + $0x10] sm:$0xff]  ;;  %v381_v22 = vld [vmem:[#allocation8 + $0x2b8] sm:$0xf]  ;;  %v2126_v30 = vrot.slane %v385_v39, 4 }
 0x721   : > { %v1766_v58 = vadd.f32 %v1762_v13, %v328_v34  ;;  %v1765_v57 = vadd.f32 %v1761_v53, %v327_v42  ;;  %v2125_v13 = vrot.slane %v384_v3, 4 }
 0x722   : > { %v1772_v60 = vrot.slane %v1764_v24, 4  ;;  %v1767_v62 = vadd.f32 %v1763_v26, %v329_v51  ;;  %v293_v26 = vld [vmem:[#allocation7 + $0x38] sm:$0x3] }
 0x723   : > { %v1774_v1 = vrot.slane %v1766_v58, 4  ;;  %v1773_v49 = vrot.slane %v1765_v57, 4 }
 0x724   : > { %v1780_v15 = vadd.f32 %v1772_v60, %v1764_v24  ;;  %v1775_v2 = vrot.slane %v1767_v62, 4 }
 0x725   : > { %v1782_v28 = vadd.f32 %v1774_v1, %v1766_v58  ;;  %v1781_v6 = vadd.f32 %v1773_v49, %v1765_v57  ;;  %v2136_v57 = vlaneseq  ;;  %v416_v1 = vld [vmem:[%s3220_s13] sm:$0xf] }
 0x726   : > { %v1783_v9 = vadd.f32 %v1775_v2, %v1767_v62  ;;  %v1784_v10 = vmul.f32 0.5, %v1780_v15 }
 0x727   : > { %v1785_v18 = vmul.f32 0.5, %v1781_v6  ;;  %v1786_v11 = vmul.f32 0.5, %v1782_v28  ;;  %v3529_v60 = vshrl.u32 %v2136_v57, 7  ;;  %v386_v6 = vld [vmem:[#allocation8 + $0x2c0] sm:$0x3] }
 0x728   : > { %v1787_v19 = vmul.f32 0.5, %v1783_v9 }
 0x729   : > { %2588 = vmatprep.subr.msk.mxu0 %vm887_vm0, %v1785_v18  ;;  %v2138_v62 = vsub.s32 0, %v3529_v60  ;;  %v2146_v49 = vsub.s32 2, %v3529_v60  ;;  %v2142_v15 = vsub.s32 1, %v3529_v60  ;;  %v2150_v2 = vsub.s32 3, %v3529_v60 }
 0x72a   : > { %2591 = vmatprep.subr.msk.mxu1 %vm887_vm0, %v1787_v19  ;;  %2589 = vmatpush1.msk.msra.mxu0 %vm887_vm0, %v1784_v10 }
 0x72b   : > { %2592 = vmatpush1.msk.msra.mxu1 %vm887_vm0, %v1786_v11  ;;  %2590 = vmatmul.mubr.msk.f32.vlgmr.msra.gmra.mrb[20].mxu0 %vm1788_vm3, %v2775_v25  ;;  %v2139_v28 = vrot.slane %v416_v1, %v2138_v62  ;;  %v2147_v9 = vrot.slane %v416_v1, %v2146_v49 }
 0x72c   : > { %2593 = vmatmul.mubr.msk.f32.vlgmr.msra.gmra.mrb[20].mxu1 %vm1788_vm3, %v2775_v25  ;;  %2029 = vmatprep.mubr.f32.mxu0 %v2981_v0 }
 0x72d   : > { %2100 = vmatprep.mubr.f32.mxu1 %v2981_v0 }
 0x7fe   : > { %v1869_v12 = vpop.f32.mrb[20].mxu0 }
 0x7ff   : > { %v1945_v4 = vsub.f32 %v1784_v10, %v1869_v12  ;;  %v1940_v46 = vpop.f32.mrb[20].mxu1  ;;  %v1871_v52 = vpop.f32.mrb[21].mxu0  ;;  %v388_v10 = vld [vmem:[#allocation8 + $0x2d0] sm:$0x3]  ;;  %v389_v12 = vld [vmem:[#allocation8 + $0x2d8] sm:$0x3] }
 0x800   : > { %v1947_v63 = vsub.f32 %v1786_v11, %v1940_v46  ;;  %v1946_v44 = vsub.f32 %v1785_v18, %v1871_v52  ;;  %v1942_v37 = vpop.f32.mrb[21].mxu1  ;;  %v2143_v18 = vrot.slane %v416_v1, %v2142_v15  ;;  %v2151_v11 = vrot.slane %v416_v1, %v2150_v2  ;;  %v392_v46 = vld [vmem:[#allocation8 + $0x2d0] sm:$0xc]  ;;  %v391_v52 = vld [vmem:[#allocation8 + $0x2c8] sm:$0xc] }
 0x801   : > { %v1948_v5 = vsub.f32 %v1787_v19, %v1942_v37  ;;  %v1949_v61 = vmul.f32 %v1945_v4, %v1945_v4  ;;  %v387_v19 = vld [vmem:[#allocation8 + $0x2c8] sm:$0x3]  ;;  %v2982_v37 = vmov 1966171168  }
 0x802   : > { %v1950_v50 = vmul.f32 %v1946_v44, %v1946_v44  ;;  %v1951_v17 = vmul.f32 %v1947_v63, %v1947_v63 }
 0x803   : > { %v1952_v14 = vmul.f32 %v1948_v5, %v1948_v5 }
 0x804   : > { %2594 = vmatprep.subr.msk.mxu0 %vm887_vm0, %v1950_v50  ;;  %v393_v50 = vld [vmem:[#allocation8 + $0x2d8] sm:$0xc] }
 0x805   : > { %2597 = vmatprep.subr.msk.mxu1 %vm887_vm0, %v1952_v14  ;;  %2595 = vmatpush1.msk.msra.mxu0 %vm887_vm0, %v1949_v61  ;;  %v2159_v14 = vmul.f32 %v2151_v11, %v389_v12 }
 0x806   : > { %2598 = vmatpush1.msk.msra.mxu1 %vm887_vm0, %v1951_v17  ;;  %2596 = vmatmul.mubr.msk.f32.vlgmr.msra.gmra.mrb[22].mxu0 %vm1788_vm3, %v2775_v25 }
 0x807   : > { %2599 = vmatmul.mubr.msk.f32.vlgmr.msra.gmra.mrb[22].mxu1 %vm1788_vm3, %v2775_v25  ;;  %2239 = vmatprep.mubr.f32.mxu0 %v2981_v0  ;;  %v390_v25 = vld [vmem:[#allocation8 + $0x2c0] sm:$0xc] }
 0x808   : > { %2310 = vmatprep.mubr.f32.mxu1 %v2981_v0  ;;  %v2321_v61 = vrot.slane %v390_v25, 2 }
 0x8d9   : > { %v2031_v21 = vpop.f32.mrb[22].mxu0 }
 0x8da   : > { %v2032_v59 = vadd.f32 1e-06, %v2031_v21  ;;  %v2102_v16 = vpop.f32.mrb[22].mxu1  ;;  %v2033_v23 = vpop.f32.mrb[23].mxu0  ;;  %v2323_v21 = vrot.slane %v392_v46, 2 }
 0x8db   : > { %v2103_v31 = vadd.f32 1e-06, %v2102_v16  ;;  %v2034_v32 = vadd.f32 1e-06, %v2033_v23  ;;  %v2104_v47 = vpop.f32.mrb[23].mxu1 }
 0x8dc   : > { %2765 = vrsqrt.f32 %v2032_v59  ;;  %v2105_v33 = vadd.f32 1e-06, %v2104_v47  ;;  %v2322_v59 = vrot.slane %v391_v52, 2 }
 0x8dd   : > { %2767 = vrsqrt.f32 %v2103_v31 }
 0x8de   : > { %2769 = vrsqrt.f32 %v2034_v32  ;;  %v2324_v32 = vrot.slane %v393_v50, 2 }
 0x8df   : > { %2771 = vrsqrt.f32 %v2105_v33 }
 0x8e6   : > { %v2766_v35 = vpop.eup %2765 }
 0x8e7   : > { %v2768_v36 = vpop.eup %2767  ;;  %v2111_v38 = vmul.f32 %v2766_v35, %v1945_v4  ;;  %v2156_v4 = vmul.f32 %v2139_v28, %v386_v6 }
 0x8e8   : > { %v2770_v0 = vpop.eup %2769  ;;  %v2113_v54 = vmul.f32 %v2768_v36, %v1947_v63  ;;  %v2158_v63 = vmul.f32 %v2147_v9, %v388_v10 }
 0x8e9   : > { %v2772_v7 = vpop.eup %2771  ;;  %v2112_v40 = vmul.f32 %v2770_v0, %v1946_v44  ;;  %v2115_v34 = vmul.f32 %v2111_v38, %v378_v27  ;;  %v2157_v44 = vmul.f32 %v2143_v18, %v387_v19 }
 0x8ea   : > { %v2114_v29 = vmul.f32 %v2772_v7, %v1948_v5  ;;  %v2117_v41 = vmul.f32 %v2113_v54, %v380_v8  ;;  %v2344_v5 = vunpack.c.l.s4 %v2982_v37 }
 0x8eb   : > { %v2116_v42 = vmul.f32 %v2112_v40, %v379_v55  ;;  %v2131_v24 = vadd.f32 %v2123_v20, %v2115_v34  ;;  %v395_v34 = vld [vmem:[#allocation8 + $0x2c4] ss:$8 sm:$0xf] }
 0x8ec   : > { %v2118_v53 = vmul.f32 %v2114_v29, %v381_v22  ;;  %v2133_v58 = vadd.f32 %v2125_v13, %v2117_v41  ;;  %v2345_v35 = vunpack.c.0.s8 %v2344_v5  ;;  %v397_v41 = vld [vmem:[#allocation8 + $0x2c5] ss:$8 sm:$0xf]  ;;  %v399_v13 = vld [vmem:[#allocation8 + $0x2c6] ss:$8 sm:$0xf] }
 0x8ed   : > { %v2132_v51 = vadd.f32 %v2124_v48, %v2116_v42 }
 0x8ee   : > { %v2134_v56 = vadd.f32 %v2126_v30, %v2118_v53  ;;  %v2348_v8 = vsub.s32 %v2345_v35, %v3529_v60 }
 0x8ef   : > { %2600 = vmatprep.subr.msk.mxu0 %vm887_vm0, %v2132_v51 }
 0x8f0   : > { %2603 = vmatprep.subr.msk.mxu1 %vm887_vm0, %v2134_v56  ;;  %2601 = vmatpush1.msk.msra.mxu0 %vm887_vm0, %v2131_v24 }
 0x8f1   : > { %2604 = vmatpush1.msk.msra.mxu1 %vm887_vm0, %v2133_v58  ;;  %2602 = vmatmul.mubr.msk.f32.vlgmr.msra.gmra.mrb[24].mxu0 %vm1788_vm3, %v293_v26 }
 0x8f2   : > { %2605 = vmatmul.mubr.msk.f32.vlgmr.msra.gmra.mrb[24].mxu1 %vm1788_vm3, %v293_v26 }
 0x9c4   : > { %v2241_v17 = vpop.f32.mrb[24].mxu0 }
 0x9c5   : > { %v2242_v16 = vadd.f32 %v2241_v17, %v2156_v4  ;;  %v2312_v23 = vpop.f32.mrb[24].mxu1  ;;  %v2243_v31 = vpop.f32.mrb[25].mxu0 }
 0x9c6   : > { %v2313_v47 = vadd.f32 %v2312_v23, %v2158_v63  ;;  %v2244_v33 = vadd.f32 %v2243_v31, %v2157_v44  ;;  %v2314_v43 = vpop.f32.mrb[25].mxu1 }
 0x9c7   : > { %v2329_v36 = vadd.f32 %v2321_v61, %v2242_v16  ;;  %v2315_v38 = vadd.f32 %v2314_v43, %v2159_v14 }
 0x9c8   : > { %v2331_v39 = vadd.f32 %v2323_v21, %v2313_v47  ;;  %v2330_v27 = vadd.f32 %v2322_v59, %v2244_v33 }
 0x9c9   : > { %v2333_v45 = vmax.f32 %v2329_v36, 0.0  ;;  %v2332_v0 = vadd.f32 %v2324_v32, %v2315_v38 }
 0x9ca   : > { %v2335_v54 = vmax.f32 %v2331_v39, 0.0  ;;  %v2334_v55 = vmax.f32 %v2330_v27, 0.0 }
 0x9cb   : > { %v2336_v3 = vmax.f32 %v2332_v0, 0.0  ;;  %v2401_v58 = vrot.slane %v2333_v45, 7 }
 0x9cc   : > { %v2341_v7 = vcombine.low %v2333_v45, %v2334_v55  ;;  %v2403_v57 = vrot.slane %v2335_v54, 7  ;;  %v2402_v1 = vrot.slane %v2334_v55, 7 }
 0x9cd   : > { %v2342_v40 = vcombine.low %v2335_v54, %v2336_v3  ;;  %v2404_v28 = vrot.slane %v2336_v3, 7 }
 0x9ce   : > { %v2349_v48 = vrot.slane %v2341_v7, %v2348_v8 }
 0x9cf   : > { %v2356_v22 = vrot.slane %v2342_v40, %v2348_v8 }
 0x9d1   : > { %v2357_v29 = vcombine.low %v2349_v48, %v2356_v22  ;;  %v2368_v30 = vcombine.high %v2349_v48, %v2356_v22 }
 0x9d3   : > { %v2364_v20 = vrot.slane %v2357_v29, %v2348_v8  ;;  %v2375_v42 = vrot.slane %v2368_v30, %v2348_v8 }
 0x9d5   : > { %v2366_v53 = vmul.f32 %v2364_v20, %v395_v34  ;;  %v2377_v56 = vmul.f32 %v2375_v42, %v397_v41 }
 0x9d7   : > { %v2367_v51 = vadd.f32 %v2366_v53, %v399_v13 }
 0x9d9   : > { %v2378_v24 = vadd.f32 %v2377_v56, %v2367_v51 }
 0x9db   : > { %2773 = vtanh.f32 %v2378_v24 }
 0x9e5   : > { %v2774_v26 = vpop.eup %2773 }
 0x9e6   : > { %v2392_v6 = vrot.slane %v2774_v26, %v2146_v49  ;;  %v2396_v9 = vrot.slane %v2774_v26, %v2150_v2  ;;  %v2384_v18 = vrot.slane %v2774_v26, %v2138_v62  ;;  %v2388_v10 = vrot.slane %v2774_v26, %v2142_v15 }
 0x9e8   : > { %v2412_v19 = vsel %vm2409_vm4, %v2392_v6, %v2403_v57  ;;  %v2413_v11 = vsel %vm2409_vm4, %v2396_v9, %v2404_v28  ;;  %v2410_v49 = vsel %vm2409_vm4, %v2384_v18, %v2401_v58  ;;  %v2411_v25 = vsel %vm2409_vm4, %v2388_v10, %v2402_v1 }
 0x9e9   : > { %v2419_v2 = vcombine.low %v2412_v19, %v2413_v11  ;;  %v2418_v12 = vcombine.low %v2410_v49, %v2411_v25 }
 0x9eb   : > { %2422 = vst [vmem:[%s282_s8] sm:$0x77] %v2418_v12  ;;  %2423 = vst [vmem:[%s282_s8 + $0x8] sm:$0x77] %v2419_v2 }
 0x9ec   : > { %2905 = shalt.err (!%p2902_p10)
}
 0x9ed   : > { %s2906_s12 = scalar_lea.hbm %s3562_s25, 256  ;;  %s2910_s20 = scalar_lea.hbm %s3610_s4, 512 }
 0x9ee   : > { %p2907_p7 = scmp.ne.s32.totalorder %s3562_s25, %s2906_s12  ;;  %p2911_p1 = scmp.lt.u32.totalorder %s3562_s25, %s3610_s4 }
 0x9ef   : > { %p2912_p0 = scmp.lt.u32.totalorder %s2910_s20, %s2906_s12  ;;  %p2914_p8 = scmp.lt.u32.totalorder %s2906_s12, %s3562_s25 }
 0x9f0   : > { %p2908_p2 = pnand %p2907_p7, %p3638_p5 }
 0x9f1   : > { %p2913_p4 = por %p2912_p0, %p2911_p1 }
 0x9f2   : > { %p2909_p3 = pneg %p2908_p2 }
 0x9f3   : > { %p2915_p11 = por %p2914_p8, %p2913_p4 }
 0x9f5   : > { %p2916_p12 = pnand %p2915_p11, %p2909_p3 }
 0x9f7   : > { %2919 = shalt.err (!%p2916_p12)
}
 0x9f8   : > { %2658 = dma.vmem_to_hbm [thread:$0]  (%p3638_p5), %s3564_s11, 256, %s3562_s25, %s2425_s19  }
 0x9f9 PF: > { %s2451_s29 = sand.u32 1, %s2958_s15   ;;  %p3639_p6 = scmp.ne.s32.totalorder %s3622_s28, 0 }
 0x9fa   : > { %p3640_p13 = scmp.ge.s32.totalorder %s2970_s18, 2  ;;  %s2452_s10 = scalar_lea.sflag [#allocation4], %s2451_s29 }
 0x9fc   : > { %p2675_p9 = pnand %p3640_p13, %p3639_p6 }
 0x9fe   : > { %2953 = dma.done.wait (!%p2675_p9), %s2452_s10, 256  }
 0x9ff   : > { %2955 = vsyncadd (!%p2675_p9), %s2452_s10, 4294967040  ;;  %p21_p10 = scmp.ge.s32.totalorder %s3034_s21, 4   ;;  %s3641_s15 = smov %s2962_s16 }
 0xa00   : > { %s3642_s16 = smov %s2966_s17  ;;  %s3643_s17 = smov %s3046_s24 }
 0xa01   : > { %s3644_s18 = smov %s3034_s21  ;;  %23 = sbr.rel (!%p21_p10) target bundleno = 12 (0xc), region = 105 }
 0xa08   :  { %2457 = vsyncpa [#allocation3], 1 }
 0xa09   :  { %2459 = vsyncpa [#allocation3 + $0x1], 1 }
 0xa0a   :  { %2460 = vsyncpa [#allocation6], 1 }
 0xa0b   :  { %2462 = vsyncpa [#allocation6 + $0x1], 1 }
 0xa0c   :  { %2463 = vsyncpa [#allocation9], 1 }
 0xa0d   :  { %2464 = vsyncpa [#allocation4], 1 }
 0xa0e   :  { %2466 = vsyncpa [#allocation4 + $0x1], 1 }

</bundles_post_ra>
